<compile_context>
chip_gen: v7x
topology: tpu7x:2x2x1
jax: 0.10.0
libtpu: 0.0.40
codegen_flags: <defaults>
</compile_context>

<pallas_src>
import math
from functools import partial

import jax
import jax.numpy as jnp
from jax.experimental import pallas as pl
from jax.experimental.pallas import tpu as pltpu


def _same_pad_amount(size, k, s):
    # TF-style SAME padding (matches DFL's same_pad helper)
    return max((math.ceil(size / s) - 1) * s + k - size, 0)


def _round_up(x, m):
    return (x + m - 1) // m * m


def _downscale_kernel(x_ref, w_ref, b_ref, o_ref, *, tm, offsets, fold, mb):
    # x_ref : (win, C4)            bf16  s2d super-block window (resident
    #                                    across the m-tile axis of this sb)
    # w_ref : (T*C4, Cp) [fold] or (T, C4, Cp)  bf16, Cout zero-padded to 128
    # b_ref : (1, Cp)              f32
    # o_ref : (Cout, tm)           bf16  transposed (lane-dense) output tile
    if mb == 1:
        base = 0                                   # fully static slicing
    else:
        base = pl.multiple_of(pl.program_id(2) * tm, tm)

    cp = b_ref.shape[-1]
    if fold:
        # Partial im2col in VMEM only: one wide-K MXU matmul, one acc pass.
        xk = jnp.concatenate(
            [x_ref[pl.ds(base + d, tm), :] for d in offsets], axis=-1)
        acc = jnp.dot(xk, w_ref[...], preferred_element_type=jnp.float32)
    else:
        acc = jnp.zeros((tm, cp), jnp.float32)
        for t, d in enumerate(offsets):            # unrolled tap reduction
            acc = acc + jnp.dot(x_ref[pl.ds(base + d, tm), :], w_ref[t],
                                preferred_element_type=jnp.float32)

    acc = acc + b_ref[...]
    acc = jnp.where(acc > 0.0, acc, 0.1 * acc)     # LeakyReLU(0.1)
    acc_t = acc.T                                  # (Cp, tm) -- lane-dense
    o_ref[...] = acc_t[: o_ref.shape[0], :].astype(o_ref.dtype)


def downscale_forward(x_nchw, weight_oihw, bias, kernel_size=5, stride=2,
                      tm_max=512, acc_budget_bytes=128 * 1024,
                      x_window_budget_bytes=6 * (1 << 20),
                      fold_k_threshold=256, out_dtype=jnp.bfloat16):
    B, Cin, H, W = x_nchw.shape
    Cout = weight_oihw.shape[0]
    k, s = kernel_size, stride

    # ---- TF-style SAME padding geometry ----
    pad_h = _same_pad_amount(H, k, s)
    pad_w = _same_pad_amount(W, k, s)
    ph0, pw0 = pad_h // 2, pad_w // 2
    Hp, Wp = H + pad_h, W + pad_w
    Ho = (Hp - k) // s + 1
    Wo = (Wp - k) // s + 1

    # ---- space-to-depth by the stride: k x k / s conv -> KP x KP / 1 conv ----
    KP = -(-k // s)                    # ceil(k / s) taps per spatial dim
    T = KP * KP
    C4 = s * s * Cin                   # s2d channel count
    Hs = Ho + KP - 1
    Ws = Wo + KP - 1
    Ws_p = _round_up(Ws, 8)            # sublane-align the p*Ws tap component
    eh = s * Hs - Hp                   # extra zero pad (hits zero weights /
    ew = s * Ws_p - Wp                 #  cropped wide positions only)
    assert eh >= 0 and ew >= 0

    xp = jnp.pad(x_nchw,
                 ((0, 0), (0, 0),
                  (ph0, pad_h - ph0 + eh), (pw0, pad_w - pw0 + ew)))
    # (B, Cin, s*Hs, s*Ws_p) -> (B, Hs*Ws_p, s*s*Cin), channel = (dy, dx, ci)
    xs = xp.reshape(B, Cin, Hs, s, Ws_p, s)          # (b, ci, r, dy, c, dx)
    xs = jnp.transpose(xs, (0, 2, 4, 3, 5, 1))       # (b, r, c, dy, dx, ci)
    xflat = xs.reshape(B, Hs * Ws_p, C4).astype(jnp.bfloat16)
    L = Hs * Ws_p

    # ---- weights: (Cout, Cin, k, k) -> per-tap (T, C4, Cp) [or (T*C4, Cp)] ----
    w = jnp.pad(weight_oihw.astype(jnp.float32),
                ((0, 0), (0, 0), (0, s * KP - k), (0, s * KP - k)))
    w = w.reshape(Cout, Cin, KP, s, KP, s)           # (co, ci, p, dy, q, dx)
    w = jnp.transpose(w, (2, 4, 3, 5, 1, 0))         # (p, q, dy, dx, ci, co)
    w = w.reshape(T, C4, Cout)
    Cp = _round_up(Cout, 128)
    w = jnp.pad(w, ((0, 0), (0, 0), (0, Cp - Cout))).astype(jnp.bfloat16)
    fold = C4 < fold_k_threshold
    if fold:
        w = w.reshape(T * C4, Cp)                    # single wide-K contraction
    b2 = jnp.pad(bias.astype(jnp.float32), (0, Cp - Cout)).reshape(1, Cp)

    # ---- tiling: m-tiles sized to the accumulator, super-blocks to VMEM ----
    tm_acc = max(128, (acc_budget_bytes // (Cp * 4)) // 128 * 128)
    tm = max(128, min(tm_max, tm_acc, _round_up(L, 128)))
    nb_total = -(-L // tm)
    d_max = (KP - 1) * (Ws_p + 1)
    C4_lanes = _round_up(C4, 128)                    # VMEM lane padding of x
    bytes_per_tile = max(tm * C4_lanes * 2, 1)
    mb = max(1, min(nb_total, x_window_budget_bytes // bytes_per_tile))
    n_sb = -(-nb_total // mb)
    mb = -(-nb_total // n_sb)                        # balanced super-blocks
    SB = mb * tm
    L_out = n_sb * mb * tm
    win = _round_up(SB + d_max, 8)                   # super-block window rows

    # ---- build (B, n_sb, win, C4) super-block windows of the s2d input ----
    need_rows = (n_sb - 1) * SB + win
    xflat = jnp.pad(xflat, ((0, 0), (0, need_rows - L), (0, 0)))
    if n_sb == 1:
        x_sb = xflat.reshape(B, 1, win, C4)          # no duplication / copy
    else:
        idx = (jnp.arange(n_sb) * SB)[:, None] + jnp.arange(win)[None, :]
        x_sb = xflat[:, idx, :]                      # tiny halo duplication

    offsets = tuple(p * Ws_p + q for p in range(KP) for q in range(KP))

    # ---- explicit VMEM budget for the compiler ----
    x_vmem = _round_up(win, 16) * C4_lanes * 2
    if fold:
        w_vmem = _round_up(T * C4, 16) * Cp * 2
    else:
        w_vmem = T * _round_up(C4, 16) * Cp * 2
    o_vmem = _round_up(Cout, 16) * tm * jnp.dtype(out_dtype).itemsize
    b_vmem = 8 * Cp * 4
    tmp_vmem = tm * _round_up(T * C4, 128) * 2 + tm * Cp * 4 + (2 << 20)
    need = 2 * (x_vmem + w_vmem + o_vmem + b_vmem) + tmp_vmem
    vmem_limit = int(min(64 << 20, max(32 << 20, int(need * 1.3))))

    cost = pl.CostEstimate(
        flops=2 * B * Ho * Wo * k * k * Cin * Cout,
        transcendentals=0,
        bytes_accessed=int(x_sb.size * 2 + w.size * 2
                           + B * Cout * L_out * jnp.dtype(out_dtype).itemsize))

    if fold:
        w_spec = pl.BlockSpec((T * C4, Cp), lambda b, sb, r: (0, 0))
    else:
        w_spec = pl.BlockSpec((T, C4, Cp), lambda b, sb, r: (0, 0, 0))

    out_t = pl.pallas_call(
        partial(_downscale_kernel, tm=tm, offsets=offsets, fold=fold, mb=mb),
        out_shape=jax.ShapeDtypeStruct((B, Cout, L_out), out_dtype),
        grid_spec=pltpu.PrefetchScalarGridSpec(
            num_scalar_prefetch=0,
            grid=(B, n_sb, mb),
            in_specs=[
                # super-block window of the s2d input (resident across r)
                pl.BlockSpec((None, None, win, C4),
                             lambda b, sb, r: (b, sb, 0, 0)),
                w_spec,
                pl.BlockSpec((1, Cp), lambda b, sb, r: (0, 0)),
            ],
            out_specs=pl.BlockSpec((None, Cout, tm),
                                   lambda b, sb, r: (b, 0, sb * mb + r)),
        ),
        compiler_params=pltpu.CompilerParams(
            dimension_semantics=("parallel", "parallel", "parallel"),
            vmem_limit_bytes=vmem_limit),
        cost_estimate=cost,
    )(x_sb, w, b2)

    # already channel-major: un-flatten + crop -> NCHW (small XLA copy)
    out = out_t[:, :, :L].reshape(B, Cout, Hs, Ws_p)[:, :, :Ho, :Wo]
    return out


def downscale_ref(x_nchw, weight_oihw, bias, kernel_size=5, stride=2):
    # Pure-JAX reference (no Pallas) for correctness checking.
    H, W = x_nchw.shape[2:]
    pad_h = _same_pad_amount(H, kernel_size, stride)
    pad_w = _same_pad_amount(W, kernel_size, stride)
    y = jax.lax.conv_general_dilated(
        x_nchw.astype(jnp.float32), weight_oihw.astype(jnp.float32),
        window_strides=(stride, stride),
        padding=[(pad_h // 2, pad_h - pad_h // 2),
                 (pad_w // 2, pad_w - pad_w // 2)],
        dimension_numbers=("NCHW", "OIHW", "NCHW"))
    y = y + bias.reshape(1, -1, 1, 1)
    return jnp.where(y > 0, y, 0.1 * y)


if __name__ == "__main__":
    B, in_ch, out_ch = 2, 4, 8
    H = W = 16
    kernel_size, stride = 5, 2

    key = jax.random.PRNGKey(0)
    kx, kw, kb = jax.random.split(key, 3)
    x = jax.random.normal(kx, (B, in_ch, H, W), dtype=jnp.float32)
    # Deterministic synthetic parameters (nn.Conv2d(in_ch, out_ch, 5) shapes).
    fan_in = in_ch * kernel_size * kernel_size
    bound = 1.0 / math.sqrt(fan_in)
    weight = jax.random.uniform(kw, (out_ch, in_ch, kernel_size, kernel_size),
                                minval=-bound, maxval=bound, dtype=jnp.float32)
    bias = jax.random.uniform(kb, (out_ch,), minval=-bound, maxval=bound,
                              dtype=jnp.float32)

    fwd = jax.jit(partial(downscale_forward,
                          kernel_size=kernel_size, stride=stride))
    y = jax.block_until_ready(fwd(x, weight, bias))

    y_ref = downscale_ref(x, weight, bias, kernel_size, stride)
    assert y.shape == y_ref.shape, (y.shape, y_ref.shape)
    y32 = y.astype(jnp.float32)
    max_err = float(jnp.max(jnp.abs(y32 - y_ref)))
    # bf16 input/weight/output streams -> looser tolerance than pure f32
    assert jnp.allclose(y32, y_ref, atol=3e-2, rtol=3e-2), max_err

    print("KERNEL_OK")
</pallas_src>

<mosaic_0001>
module attributes {stable_mosaic.version = 11 : i64} {
  func.func @_downscale_kernel(%arg0: i32, %arg1: i32, %arg2: i32, %arg3: memref<1x1x296x16xbf16, #tpu.memory_space<vmem>>, %arg4: memref<144x128xbf16, #tpu.memory_space<vmem>>, %arg5: memref<1x128xf32, #tpu.memory_space<vmem>>, %arg6: memref<1x8x256xbf16, #tpu.memory_space<vmem>>) attributes {dimension_semantics = [#tpu.dimension_semantics<parallel>, #tpu.dimension_semantics<parallel>, #tpu.dimension_semantics<parallel>], iteration_bounds = array<i64: 2, 1, 1>, scalar_prefetch = 0 : i64, scratch_operands = 0 : i64, tpu.core_type = #tpu.core_type<tc>, window_params = [{transform_indices = @transform_0, window_bounds = array<i64: 1, 1, 296, 16>}, {pipeline_mode = #tpu.pipeline_mode<synchronous>, transform_indices = @transform_1, window_bounds = array<i64: 144, 128>}, {pipeline_mode = #tpu.pipeline_mode<synchronous>, transform_indices = @transform_2, window_bounds = array<i64: 1, 128>}, {transform_indices = @transform_3, window_bounds = array<i64: 1, 8, 256>}]} {
    %c0 = arith.constant 0 : index
    %c0_0 = arith.constant 0 : index
    %c0_1 = arith.constant 0 : index
    %c0_2 = arith.constant 0 : index
    %0 = vector.load %arg3[%c0, %c0_0, %c0_1, %c0_2] : memref<1x1x296x16xbf16, #tpu.memory_space<vmem>>, vector<1x1x256x16xbf16>
    %1 = vector.shape_cast %0 : vector<1x1x256x16xbf16> to vector<256x16xbf16>
    %c0_3 = arith.constant 0 : index
    %c0_4 = arith.constant 0 : index
    %c1 = arith.constant 1 : index
    %c0_5 = arith.constant 0 : index
    %2 = vector.load %arg3[%c0_3, %c0_4, %c1, %c0_5] : memref<1x1x296x16xbf16, #tpu.memory_space<vmem>>, vector<1x1x256x16xbf16>
    %3 = vector.shape_cast %2 : vector<1x1x256x16xbf16> to vector<256x16xbf16>
    %c0_6 = arith.constant 0 : index
    %c0_7 = arith.constant 0 : index
    %c2 = arith.constant 2 : index
    %c0_8 = arith.constant 0 : index
    %4 = vector.load %arg3[%c0_6, %c0_7, %c2, %c0_8] : memref<1x1x296x16xbf16, #tpu.memory_space<vmem>>, vector<1x1x256x16xbf16>
    %5 = vector.shape_cast %4 : vector<1x1x256x16xbf16> to vector<256x16xbf16>
    %c0_9 = arith.constant 0 : index
    %c0_10 = arith.constant 0 : index
    %c16 = arith.constant 16 : index
    %c0_11 = arith.constant 0 : index
    %6 = vector.load %arg3[%c0_9, %c0_10, %c16, %c0_11] : memref<1x1x296x16xbf16, #tpu.memory_space<vmem>>, vector<1x1x256x16xbf16>
    %7 = vector.shape_cast %6 : vector<1x1x256x16xbf16> to vector<256x16xbf16>
    %c0_12 = arith.constant 0 : index
    %c0_13 = arith.constant 0 : index
    %c17 = arith.constant 17 : index
    %c0_14 = arith.constant 0 : index
    %8 = vector.load %arg3[%c0_12, %c0_13, %c17, %c0_14] : memref<1x1x296x16xbf16, #tpu.memory_space<vmem>>, vector<1x1x256x16xbf16>
    %9 = vector.shape_cast %8 : vector<1x1x256x16xbf16> to vector<256x16xbf16>
    %c0_15 = arith.constant 0 : index
    %c0_16 = arith.constant 0 : index
    %c18 = arith.constant 18 : index
    %c0_17 = arith.constant 0 : index
    %10 = vector.load %arg3[%c0_15, %c0_16, %c18, %c0_17] : memref<1x1x296x16xbf16, #tpu.memory_space<vmem>>, vector<1x1x256x16xbf16>
    %11 = vector.shape_cast %10 : vector<1x1x256x16xbf16> to vector<256x16xbf16>
    %c0_18 = arith.constant 0 : index
    %c0_19 = arith.constant 0 : index
    %c32 = arith.constant 32 : index
    %c0_20 = arith.constant 0 : index
    %12 = vector.load %arg3[%c0_18, %c0_19, %c32, %c0_20] : memref<1x1x296x16xbf16, #tpu.memory_space<vmem>>, vector<1x1x256x16xbf16>
    %13 = vector.shape_cast %12 : vector<1x1x256x16xbf16> to vector<256x16xbf16>
    %c0_21 = arith.constant 0 : index
    %c0_22 = arith.constant 0 : index
    %c33 = arith.constant 33 : index
    %c0_23 = arith.constant 0 : index
    %14 = vector.load %arg3[%c0_21, %c0_22, %c33, %c0_23] : memref<1x1x296x16xbf16, #tpu.memory_space<vmem>>, vector<1x1x256x16xbf16>
    %15 = vector.shape_cast %14 : vector<1x1x256x16xbf16> to vector<256x16xbf16>
    %c0_24 = arith.constant 0 : index
    %c0_25 = arith.constant 0 : index
    %c34 = arith.constant 34 : index
    %c0_26 = arith.constant 0 : index
    %16 = vector.load %arg3[%c0_24, %c0_25, %c34, %c0_26] : memref<1x1x296x16xbf16, #tpu.memory_space<vmem>>, vector<1x1x256x16xbf16>
    %17 = vector.shape_cast %16 : vector<1x1x256x16xbf16> to vector<256x16xbf16>
    %18 = tpu.concatenate %1, %3, %5, %7, %9, %11, %13, %15, %17 in 1 : vector<256x16xbf16>, vector<256x16xbf16>, vector<256x16xbf16>, vector<256x16xbf16>, vector<256x16xbf16>, vector<256x16xbf16>, vector<256x16xbf16>, vector<256x16xbf16>, vector<256x16xbf16> -> vector<256x144xbf16>
    %c0_27 = arith.constant 0 : index
    %c0_28 = arith.constant 0 : index
    %19 = vector.load %arg4[%c0_27, %c0_28] : memref<144x128xbf16, #tpu.memory_space<vmem>>, vector<144x128xbf16>
    %cst = arith.constant dense<0.000000e+00> : vector<256x128xf32>
    %20 = tpu.matmul %18, %19, %cst {dimension_numbers = #tpu.dot_dimension_numbers<[1], [0], [0], [1], [0, 0, 1, 1], [], []>} : vector<256x144xbf16>, vector<144x128xbf16>, vector<256x128xf32> -> vector<256x128xf32>
    %c0_29 = arith.constant 0 : index
    %c0_30 = arith.constant 0 : index
    %21 = vector.load %arg5[%c0_29, %c0_30] : memref<1x128xf32, #tpu.memory_space<vmem>>, vector<1x128xf32>
    %22 = vector.broadcast %21 : vector<1x128xf32> to vector<256x128xf32>
    %23 = arith.addf %20, %22 : vector<256x128xf32>
    %cst_31 = arith.constant 0.000000e+00 : f32
    %24 = vector.broadcast %cst_31 : f32 to vector<256x128xf32>
    %25 = arith.cmpf ogt, %23, %24 : vector<256x128xf32>
    %cst_32 = arith.constant 1.000000e-01 : f32
    %26 = vector.broadcast %cst_32 : f32 to vector<256x128xf32>
    %27 = arith.mulf %26, %23 : vector<256x128xf32>
    %28 = arith.select %25, %23, %27 : vector<256x128xi1>, vector<256x128xf32>
    %29 = tpu.transpose %28, [1, 0] : vector<256x128xf32> -> vector<128x256xf32>
    %30 = vector.extract_strided_slice %29 {offsets = [0, 0], sizes = [8, 256], strides = [1, 1]} : vector<128x256xf32> to vector<8x256xf32>
    %31 = arith.truncf %30 : vector<8x256xf32> to vector<8x256xbf16>
    %c0_33 = arith.constant 0 : index
    %c0_34 = arith.constant 0 : index
    %c0_35 = arith.constant 0 : index
    %32 = vector.load %arg6[%c0_33, %c0_34, %c0_35] : memref<1x8x256xbf16, #tpu.memory_space<vmem>>, vector<1x8x256xbf16>
    %33 = vector.shape_cast %32 : vector<1x8x256xbf16> to vector<8x256xbf16>
    %34 = vector.shape_cast %31 : vector<8x256xbf16> to vector<1x8x256xbf16>
    tpu.vector_store %arg6[%c0_33, %c0_34, %c0_35], %34 {strides = array<i32>} : memref<1x8x256xbf16, #tpu.memory_space<vmem>>, vector<1x8x256xbf16>,
    return
  }
  func.func @transform_0(%arg0: i32, %arg1: i32, %arg2: i32) -> (i32, i32, i32, i32) {
    %c0_i32 = arith.constant 0 : i32
    %c0_i32_0 = arith.constant 0 : i32
    %c0_i32_1 = arith.constant 0 : i32
    return %arg0, %arg1, %c0_i32, %c0_i32_0 : i32, i32, i32, i32
  }
  func.func @transform_1(%arg0: i32, %arg1: i32, %arg2: i32) -> (i32, i32) {
    %c0_i32 = arith.constant 0 : i32
    %c0_i32_0 = arith.constant 0 : i32
    %c0_i32_1 = arith.constant 0 : i32
    return %c0_i32, %c0_i32_0 : i32, i32
  }
  func.func @transform_2(%arg0: i32, %arg1: i32, %arg2: i32) -> (i32, i32) {
    %c0_i32 = arith.constant 0 : i32
    %c0_i32_0 = arith.constant 0 : i32
    %c0_i32_1 = arith.constant 0 : i32
    return %c0_i32, %c0_i32_0 : i32, i32
  }
  func.func @transform_3(%arg0: i32, %arg1: i32, %arg2: i32) -> (i32, i32, i32) {
    %c1_i32 = arith.constant 1 : i32
    %0 = arith.muli %arg1, %c1_i32 : i32
    %1 = arith.addi %0, %arg2 : i32
    %c0_i32 = arith.constant 0 : i32
    %c0_i32_0 = arith.constant 0 : i32
    return %arg0, %c0_i32, %1 : i32, i32, i32
  }
}

</mosaic_0001>

<bundles_post_ra>
// kernel: downscale_forward.1
= control target key start
LH: loop header
LB: loop body
LE: loop exit
PB: predicated region body
PF: predicated region fallthrough
CT: control target
= control target key end

     0   :  { %s1836_s12 = smov 0   ;;  %s1838_s13 = smov 0   ;;  %s2557_s0 = inlined_call_operand.vmem [shape: bf16[2,1,296,16], index: 0, kind: input, shape index: {}]   ;;  %s2558_s1 = inlined_call_operand.vmem [shape: bf16[144,128], index: 1, kind: input, shape index: {}]   ;;  %s2559_s2 = inlined_call_operand.vmem [shape: f32[1,128], index: 2, kind: input, shape index: {}]   ;;  %s2560_s3 = inlined_call_operand.vmem [shape: bf16[2,8,256], index: 3, kind: output, shape index: {}]  }
   0x1   :  { %s1840_s14 = smov 0  }
   0x2 LB: > { %s32_s15 = sadd.s32 1, %s1802_s13  ;;  %p1604_p0 = scmp.ge.s32.totalorder %s1806_s14, 1  ;;  %s1806_s14 = sphi %s1840_s14, %s13_s14   ;;  %s1802_s13 = sphi %s1838_s13, %s2562_s13   ;;  %s1798_s12 = sphi %s1836_s12, %s2561_s12  }
   0x3   : > { %p34_p1 = scmp.ge.s32.totalorder %s32_s15, 2  ;;  %p166_p2 = scmp.lt.s32.totalorder %s1806_s14, 3 }
   0x5   : > { %s2564_s15 = smov (%p34_p1, %s32_s15), 0  ;;  %p167_p3 = pnand %p1604_p0, %p166_p2 }
   0x6   : > { %p199_p4 = scmp.lt.s32.totalorder (!%p167_p3), %s1798_s12, 1  ;;  %v1808_v0 = vmov (!%p167_p3), 0   ;;  %v1765_v1 = vld [vmem:[%s2558_s1] sm:$0xff] (!%p167_p3)   ;;  %v1768_v2 = vld [vmem:[%s2558_s1 + $0x8] sm:$0xff] (!%p167_p3)   ;;  %vm514_vm0 = vcmask (!%p167_p3), 1046528   ;;  %v1769_v3 = vld [vmem:[%s2558_s1 + $0x10] sm:$0xff] (!%p167_p3)  }
   0x7   : > { %170 = sbr.rel (%p167_p3) target bundleno = 656 (0x290), region = 32  ;;  %1174 = vmatprep.subr.bf16.mxu0 (!%p167_p3), %v1808_v0  ;;  %1663 = vmatprep.subr.bf16.mxu1 (!%p167_p3), %v1808_v0  ;;  %vm346_vm1 = vsmask.f32 (!%p167_p3), 7424  ;;  %s1809_s26 = smov (!%p167_p3), 48   ;;  %v1770_v16 = vld [vmem:[%s2558_s1 + $0x18] sm:$0xff] (!%p167_p3)   ;;  %v1771_v46 = vld [vmem:[%s2558_s1 + $0x20] sm:$0xff] (!%p167_p3)  }
   0x8   : > { %1175 = vmatpush1.bf16.msra.mxu0 (!%p167_p3), %v1765_v1  ;;  %1672 = vmatpush1.bf16.msra.mxu1 (!%p167_p3), %v1765_v1  ;;  %s1810_s29 = smov (!%p167_p3), 80   ;;  %s1811_s30 = smov (!%p167_p3), 32   ;;  %vm800_vm2 = vcmask (!%p167_p3), 130048   ;;  %vm833_vm3 = vcmask (!%p167_p3), 261120   ;;  %vm866_vm4 = vcmask (!%p167_p3), 392192   ;;  %vm899_vm5 = vcmask (!%p167_p3), 523264  }
   0x9   : > { %1176 = vmatprep.subr.bf16.mxu0 (!%p167_p3), %v1808_v0  ;;  %1664 = vmatprep.subr.bf16.mxu1 (!%p167_p3), %v1808_v0  ;;  %s1812_s6 = smov (!%p167_p3), 16   ;;  %s1813_s9 = smov (!%p167_p3), 64   ;;  %vm932_vm6 = vcmask (!%p167_p3), 654336   ;;  %vm965_vm7 = vcmask (!%p167_p3), 785408   ;;  %vm998_vm8 = vcmask (!%p167_p3), 916480  }
   0xa   : > { %s1814_s16 = smov (!%p167_p3), 96   ;;  %s1815_s19 = smov (!%p167_p3), 112  }
   0xc   : > { %1177 = vmatpush1.bf16.msra.mxu0 (!%p167_p3), %v1768_v2  ;;  %1673 = vmatpush1.bf16.msra.mxu1 (!%p167_p3), %v1768_v2  ;;  %v1772_v2 = vld [vmem:[%s2558_s1 + $0x28] sm:$0xff] (!%p167_p3)  }
   0xd   : > { %1178 = vmatprep.subr.bf16.mxu0 (!%p167_p3), %v1808_v0  ;;  %1665 = vmatprep.subr.bf16.mxu1 (!%p167_p3), %v1808_v0 }
   0xe   : > { %s2566_s12 = smov (!%p199_p4, %s1798_s12), 1 }
   0xf   : > { %s1681_s18 = smul.u32 148, %s2566_s12  ;;  %s1661_s24 = sshll.u32 %s2566_s12, 3 }
  0x10   : > { %1179 = vmatpush1.bf16.msra.mxu0 %v1769_v3  ;;  %1674 = vmatpush1.bf16.msra.mxu1 %v1769_v3  ;;  %s217_s27 = scalar_lea.vmem %s2560_s3, %s1661_s24 }
  0x11   : > { %s1870_s23 = scalar_lea.vmem %s2557_s0, %s1681_s18  ;;  %1180 = vmatprep.subr.bf16.mxu0 %v1808_v0  ;;  %1666 = vmatprep.subr.bf16.mxu1 %v1808_v0 }
  0x12   : > { %v1876_v4 = vld [vmem:[%s1870_s23 + $0x48] sm:$0xff]   ;;  %v225_v7 = vld [vmem:[%s1870_s23 + $0x10] sm:$0xf]  ;;  %v1886_v9 = vld [vmem:[%s1870_s23 + $0x14] sm:$0xf] }
  0x13   : > { %v223_v5 = vld [vmem:[%s1870_s23 + $0x8] sm:$0xf]  ;;  %v224_v6 = vld [vmem:[%s1870_s23 + $0xc] sm:$0xf]  ;;  %601 = vrot.lane.b32.xlu1 %v1876_v4, %s1809_s26  ;;  %v222_v11 = vld [vmem:[%s1870_s23 + $0x4] sm:$0xf]  ;;  %v1892_v12 = vcombine.low %v225_v7, %v1886_v9 }
  0x14   : > { %v1883_v8 = vcombine.low %v223_v5, %v224_v6  ;;  %v258_v10 = vld [vmem:[%s1870_s23 + $0x8] sm:$0xe]  ;;  %v254_v14 = vld [vmem:[%s1870_s23] sm:$0xe]  ;;  %v532_v21 = vrot.slane %v1876_v4, 1  ;;  %v1910_v22 = vld [vmem:[%s1870_s23 + $0x50] sm:$0xff]   ;;  %1181 = vmatpush1.bf16.msra.mxu0 %v1770_v16  ;;  %1675 = vmatpush1.bf16.msra.mxu1 %v1770_v16 }
  0x15   : > { %v1628_v13 = vcombine.low %v258_v10, %v224_v6  ;;  %v221_v15 = vld [vmem:[%s1870_s23] sm:$0xf]  ;;  %v1625_v17 = vcombine.low %v254_v14, %v222_v11  ;;  %v1913_v23 = vrot.slane %v1892_v12, 1  ;;  %v419_v26 = vshll.u32 %v1876_v4, 16  ;;  %1182 = vmatprep.subr.bf16.mxu0 %v1808_v0  ;;  %1667 = vmatprep.subr.bf16.mxu1 %v1808_v0  ;;  %v1951_v49 = vld [vmem:[%s1870_s23 + $0x58] sm:$0xff]   ;;  %v1773_v10 = vld [vmem:[%s2558_s1 + $0x30] sm:$0xff]  }
  0x16   : > { %585 = vrot.lane.b32.xlu0 %v1883_v8, %s1809_s26  ;;  %v516_v18 = vrot.slane %v1883_v8, 1  ;;  %v1903_v19 = vcombine.low %v221_v15, %v222_v11  ;;  %v1906_v20 = vld [vmem:[%s1870_s23 + $0x40] sm:$0xff]   ;;  %v355_v25 = vshll.u32 %v1883_v8, 16  ;;  %v534_v33 = vrot.slane %v1910_v22, 1  ;;  %v1957_v52 = vld [vmem:[%s1870_s23 + $0x18] sm:$0xff]  }
  0x17   : > { %v668_v24 = vrot.slane %v1628_v13, 1  ;;  %v515_v27 = vrot.slane %v1625_v17, 1  ;;  %v530_v28 = vrot.slane %v1906_v20, 1  ;;  %v411_v34 = vshll.u32 %v1906_v20, 16  ;;  %v1774_v14 = vld [vmem:[%s2558_s1 + $0x38] sm:$0xff]   ;;  %v1777_v17 = vld [vmem:[%s2558_s1 + $0x40] sm:$0xff]  }
  0x18   : > { %v348_v29 = vshrl.u32 %v1903_v19, 16  ;;  %v350_v30 = vshll.u32 %v1903_v19, 16  ;;  %v357_v32 = vrot.slane %v355_v25, 1  ;;  %v415_v37 = vshrl.u32 %v1906_v20, 16  ;;  %1183 = vmatpush1.bf16.msra.mxu0 %v1771_v46  ;;  %1676 = vmatpush1.bf16.msra.mxu1 %v1771_v46  ;;  %v262_v15 = vld [vmem:[%s1870_s23 + $0x10] sm:$0xe] }
  0x19   : > { %v669_v31 = vsel %vm514_vm0, %v668_v24, %v1913_v23  ;;  %v517_v35 = vsel %vm514_vm0, %v515_v27, %v516_v18  ;;  %v1935_v38 = vsel %vm514_vm0, %v530_v28, %v532_v21  ;;  %v1937_v39 = vrot.slane %v411_v34, 1  ;;  %1184 = vmatprep.subr.bf16.mxu0 %v1808_v0  ;;  %1668 = vmatprep.subr.bf16.mxu1 %v1808_v0 }
  0x1a   : > { %674 = vrot.lane.b32.xlu0 %v669_v31, %s1810_s29  ;;  %v352_v36 = vrot.slane %v350_v30, 1  ;;  %548 = vrot.lane.b32.xlu1 %v517_v35, %s1811_s30  ;;  %v421_v40 = vrot.slane %v419_v26, 1  ;;  %v423_v41 = vshrl.u32 %v1876_v4, 16  ;;  %v427_v43 = vshll.u32 %v1910_v22, 16  ;;  %v2039_v26 = vld [vmem:[%s1870_s23 + $0x20] sm:$0xff]  }
  0x1b   : > { %v359_v44 = vshrl.u32 %v1883_v8, 16  ;;  %v363_v45 = vshll.u32 %v1892_v12, 16  ;;  %v417_v47 = vor.u32 %v415_v37, %v1937_v39  ;;  %v1960_v53 = vsel %vm514_vm0, %v532_v21, %v534_v33  ;;  %v2070_v37 = vld [vmem:[%s1870_s23 + $0x68] sm:$0xff]  }
  0x1c   : > { %v353_v42 = vor.u32 %v352_v36, %v348_v29  ;;  %v429_v50 = vrot.slane %v427_v43, 1  ;;  %v425_v55 = vor.u32 %v423_v41, %v421_v40  ;;  %v536_v57 = vrot.slane %v1951_v49, 1  ;;  %1185 = vmatpush1.bf16.msra.mxu0 %v1772_v2  ;;  %1677 = vmatpush1.bf16.msra.mxu1 %v1772_v2 }
  0x1d   : > { %v365_v51 = vrot.slane %v363_v45, 1  ;;  %v1963_v54 = vsel %vm346_vm1, %v417_v47, %v421_v40  ;;  %v361_v56 = vor.u32 %v359_v44, %v357_v32  ;;  %v431_v58 = vshrl.u32 %v1910_v22, 16  ;;  %1186 = vmatprep.subr.bf16.mxu0 %v1808_v0  ;;  %1669 = vmatprep.subr.bf16.mxu1 %v1808_v0 }
  0x1e   : > { %v358_v48 = vsel %vm346_vm1, %v353_v42, %v357_v32  ;;  %564 = vrot.lane.b32.xlu1 %v1935_v38, %s1811_s30  ;;  %v435_v59 = vshll.u32 %v1951_v49, 16  ;;  %v1977_v60 = vsel %vm514_vm0, %v534_v33, %v536_v57  ;;  %v1980_v61 = vsel %vm346_vm1, %v425_v55, %v429_v50  ;;  %v2075_v42 = vld [vmem:[%s1870_s23 + $0x28] sm:$0xff]  }
  0x1f   : > { %479 = vrot.lane.b32.xlu0 %v358_v48, %s1812_s6  ;;  %v366_v62 = vsel %vm346_vm1, %v361_v56, %v365_v51  ;;  %v367_v63 = vshrl.u32 %v1892_v12, 16  ;;  %v371_v1 = vshll.u32 %v1957_v52, 16  ;;  %1650 = vmatprep.mubr.msk.bf16.mxu1 %vm800_vm2, %v1977_v60  ;;  %v433_v3 = vor.u32 %v431_v58, %v429_v50 }
  0x20   : > { %v437_v5 = vrot.slane %v435_v59, 1  ;;  %1187 = vmatpush1.bf16.msra.mxu0 %v1773_v10  ;;  %1678 = vmatpush1.bf16.msra.mxu1 %v1773_v10  ;;  %v1631_v16 = vcombine.low %v262_v15, %v1886_v9  ;;  %v520_v21 = vrot.slane %v1957_v52, 1  ;;  %v519_v25 = vsel %vm514_vm0, %v516_v18, %v1913_v23  ;;  %v2114_v59 = vld [vmem:[%s1870_s23 + $0x70] sm:$0xff]  }
  0x21   : > { %v369_v6 = vor.u32 %v367_v63, %v365_v51  ;;  %v373_v7 = vrot.slane %v371_v1, 1  ;;  %1188 = vmatprep.subr.bf16.mxu0 %v1808_v0  ;;  %1670 = vmatprep.subr.bf16.mxu1 %v1808_v0  ;;  %v439_v18 = vshrl.u32 %v1951_v49, 16  ;;  %v375_v30 = vshrl.u32 %v1957_v52, 16  ;;  %v2119_v63 = vld [vmem:[%s1870_s23 + $0x30] sm:$0xff]  }
  0x22   : > { %690 = vrot.lane.b32.xlu1 %v1960_v53, %s1810_s29  ;;  %v438_v11 = vsel %vm346_vm1, %v433_v3, %v437_v5  ;;  %v794_v24 = vrot.slane %v1631_v16, 1  ;;  %v521_v27 = vsel %vm514_vm0, %v1913_v23, %v520_v21  ;;  %v379_v31 = vshll.u32 %v2039_v26, 16 }
  0x23   : > { %495 = vrot.lane.b32.xlu0 %v1963_v54, %s1812_s6  ;;  %v374_v13 = vsel %vm346_vm1, %v369_v6, %v373_v7  ;;  %v441_v32 = vor.u32 %v439_v18, %v437_v5  ;;  %v377_v34 = vor.u32 %v375_v30, %v373_v7  ;;  %v522_v41 = vrot.slane %v2039_v26, 1 }
  0x24   : > { %1189 = vmatpush1.bf16.msra.mxu0 %v1774_v14  ;;  %1679 = vmatpush1.bf16.msra.mxu1 %v1774_v14  ;;  %v795_v9 = vsel %vm514_vm0, %v794_v24, %v520_v21  ;;  %v381_v35 = vrot.slane %v379_v31, 1  ;;  %v451_v44 = vshll.u32 %v2070_v37, 16  ;;  %v383_v47 = vshrl.u32 %v2039_v26, 16 }
  0x25   : > { %1190 = vmatprep.subr.bf16.mxu0 %v1808_v0  ;;  %1671 = vmatprep.subr.bf16.mxu1 %v1808_v0  ;;  %v2036_v0 = vld [vmem:[%s1870_s23 + $0x60] sm:$0xff]   ;;  %v2087_v46 = vsel %vm514_vm0, %v520_v21, %v522_v41  ;;  %v387_v48 = vshll.u32 %v2075_v42, 16  ;;  %v455_v1 = vshrl.u32 %v2070_v37, 16  ;;  %v459_v2 = vshll.u32 %v2114_v59, 16 }
  0x26   : > { %649 = vrot.lane.b32.xlu1 %v1980_v61, %s1813_s9  ;;  %1642 = vmatprep.mubr.msk.bf16.mxu0 %vm800_vm2, %v795_v9  ;;  %v443_v29 = vshll.u32 %v2036_v0, 16  ;;  %v382_v36 = vsel %vm346_vm1, %v377_v34, %v381_v35  ;;  %v538_v40 = vrot.slane %v2036_v0, 1  ;;  %v447_v43 = vshrl.u32 %v2036_v0, 16 }
  0x27   : > { %633 = vrot.lane.b32.xlu0 %v366_v62, %s1813_s9  ;;  %v453_v51 = vrot.slane %v451_v44, 1  ;;  %v385_v55 = vor.u32 %v383_v47, %v381_v35  ;;  %v389_v56 = vrot.slane %v387_v48, 1  ;;  %v391_v6 = vshrl.u32 %v2075_v42, 16 }
  0x28   : > { %1191 = vmatpush1.bf16.msra.mxu0 %v1777_v17  ;;  %1680 = vmatpush1.bf16.msra.mxu1 %v1777_v17  ;;  %v445_v33 = vrot.slane %v443_v29, 1  ;;  %v2084_v45 = vsel %vm514_vm0, %v536_v57, %v538_v40  ;;  %v395_v7 = vshll.u32 %v2119_v63, 16  ;;  %v526_v18 = vrot.slane %v2119_v63, 1  ;;  %v2167_v29 = vld [vmem:[%s1870_s23 + $0x38] sm:$0xff]  }
  0x29   : > { %v390_v58 = vsel %vm346_vm1, %v385_v55, %v389_v56  ;;  %v457_v10 = vor.u32 %v455_v1, %v453_v51  ;;  %v463_v34 = vshrl.u32 %v2114_v59, 16 }
  0x2a   : > { %727 = vrot.lane.b32.xlu1 %v1910_v22, %s1814_s16  ;;  %v446_v23 = vsel %vm346_vm1, %v441_v32, %v445_v33  ;;  %v449_v50 = vor.u32 %v447_v43, %v445_v33  ;;  %v397_v14 = vrot.slane %v395_v7, 1 }
  0x2b   : > { %711 = vrot.lane.b32.xlu0 %v1892_v12, %s1814_s16 }
  0x2c   : > { %v454_v57 = vsel %vm346_vm1, %v449_v50, %v453_v51 }
  0x2e   : > { %775 = vrot.lane.b32.xlu1 %v438_v11, %s1815_s19 }
  0x2f   : > { %759 = vrot.lane.b32.xlu0 %v374_v13, %s1815_s19 }
  0x32   : > { %497 = vrot.lane.b32.xlu1 %v1980_v61, %s1812_s6 }
  0x33   : > { %481 = vrot.lane.b32.xlu0 %v366_v62, %s1812_s6  ;;  %v524_v62 = vrot.slane %v2075_v42, 1 }
  0x35   : > { %v2129_v5 = vsel %vm514_vm0, %v522_v41, %v524_v62  ;;  %v2181_v33 = vsel %vm514_vm0, %v524_v62, %v526_v18 }
  0x36   : > { %566 = vrot.lane.b32.xlu1 %v1960_v53, %s1811_s30 }
  0x37   : > { %550 = vrot.lane.b32.xlu0 %v519_v25, %s1811_s30  ;;  %v542_v25 = vrot.slane %v2114_v59, 1 }
  0x3a   : > { %603 = vrot.lane.b32.xlu1 %v1910_v22, %s1809_s26 }
  0x3b   : > { %587 = vrot.lane.b32.xlu0 %v1892_v12, %s1809_s26 }
  0x3e   : > { %651 = vrot.lane.b32.xlu1 %v438_v11, %s1813_s9 }
  0x3f   : > { %635 = vrot.lane.b32.xlu0 %v374_v13, %s1813_s9 }
  0x42   : > { %692 = vrot.lane.b32.xlu1 %v1977_v60, %s1810_s29 }
  0x43   : > { %676 = vrot.lane.b32.xlu0 %v521_v27, %s1810_s29 }
  0x46   : > { %729 = vrot.lane.b32.xlu1 %v1951_v49, %s1814_s16 }
  0x47   : > { %713 = vrot.lane.b32.xlu0 %v1957_v52, %s1814_s16 }
  0x4a   : > { %777 = vrot.lane.b32.xlu1 %v446_v23, %s1815_s19 }
  0x4b   : > { %761 = vrot.lane.b32.xlu0 %v382_v36, %s1815_s19 }
  0x4e   : > { %499 = vrot.lane.b32.xlu1 %v438_v11, %s1812_s6  ;;  %v461_v11 = vrot.slane %v459_v2, 1 }
  0x4f   : > { %483 = vrot.lane.b32.xlu0 %v374_v13, %s1812_s6  ;;  %v393_v13 = vor.u32 %v391_v6, %v389_v56 }
  0x50   : > { %v2142_v15 = vsel %vm346_vm1, %v457_v10, %v461_v11  ;;  %v465_v48 = vor.u32 %v463_v34, %v461_v11 }
  0x51   : > { %v2145_v16 = vsel %vm346_vm1, %v393_v13, %v397_v14 }
  0x52   : > { %568 = vrot.lane.b32.xlu1 %v1977_v60, %s1811_s30  ;;  %v540_v60 = vrot.slane %v2070_v37, 1 }
  0x53   : > { %552 = vrot.lane.b32.xlu0 %v521_v27, %s1811_s30  ;;  %v2164_v27 = vld [vmem:[%s1870_s23 + $0x78] sm:$0xff]  }
  0x54   : > { %v2126_v3 = vsel %vm514_vm0, %v538_v40, %v540_v60  ;;  %v2176_v32 = vsel %vm514_vm0, %v540_v60, %v542_v25  ;;  %v467_v35 = vshll.u32 %v2164_v27, 16 }
  0x56   : > { %605 = vrot.lane.b32.xlu1 %v1951_v49, %s1809_s26  ;;  %v469_v50 = vrot.slane %v467_v35, 1 }
  0x57   : > { %589 = vrot.lane.b32.xlu0 %v1957_v52, %s1809_s26 }
  0x58   : > { %v2204_v62 = vsel %vm346_vm1, %v465_v48, %v469_v50 }
  0x5a   : > { %653 = vrot.lane.b32.xlu1 %v446_v23, %s1813_s9 }
  0x5b   : > { %637 = vrot.lane.b32.xlu0 %v382_v36, %s1813_s9 }
  0x5e   : > { %694 = vrot.lane.b32.xlu1 %v2084_v45, %s1810_s29 }
  0x5f   : > { %678 = vrot.lane.b32.xlu0 %v2087_v46, %s1810_s29 }
  0x62   : > { %731 = vrot.lane.b32.xlu1 %v2036_v0, %s1814_s16 }
  0x63   : > { %715 = vrot.lane.b32.xlu0 %v2039_v26, %s1814_s16 }
  0x66   : > { %779 = vrot.lane.b32.xlu1 %v454_v57, %s1815_s19 }
  0x67   : > { %763 = vrot.lane.b32.xlu0 %v390_v58, %s1815_s19 }
  0x6a   : > { %501 = vrot.lane.b32.xlu1 %v446_v23, %s1812_s6  ;;  %v399_v23 = vshrl.u32 %v2119_v63, 16 }
  0x6b   : > { %485 = vrot.lane.b32.xlu0 %v382_v36, %s1812_s6  ;;  %v403_v36 = vshll.u32 %v2167_v29, 16 }
  0x6c   : > { %v401_v51 = vor.u32 %v399_v23, %v397_v14 }
  0x6d   : > { %v405_v55 = vrot.slane %v403_v36, 1 }
  0x6e   : > { %570 = vrot.lane.b32.xlu1 %v2084_v45, %s1811_s30 }
  0x6f   : > { %554 = vrot.lane.b32.xlu0 %v2087_v46, %s1811_s30  ;;  %v2207_v1 = vsel %vm346_vm1, %v401_v51, %v405_v55 }
  0x72   : > { %607 = vrot.lane.b32.xlu1 %v2036_v0, %s1809_s26 }
  0x73   : > { %591 = vrot.lane.b32.xlu0 %v2039_v26, %s1809_s26 }
  0x76   : > { %655 = vrot.lane.b32.xlu1 %v454_v57, %s1813_s9 }
  0x77   : > { %639 = vrot.lane.b32.xlu0 %v390_v58, %s1813_s9 }
  0x7a   : > { %696 = vrot.lane.b32.xlu1 %v2126_v3, %s1810_s29 }
  0x7b   : > { %680 = vrot.lane.b32.xlu0 %v2129_v5, %s1810_s29 }
  0x7e   : > { %733 = vrot.lane.b32.xlu1 %v2070_v37, %s1814_s16 }
  0x7f   : > { %717 = vrot.lane.b32.xlu0 %v2075_v42, %s1814_s16 }
  0x82   : > { %781 = vrot.lane.b32.xlu1 %v2142_v15, %s1815_s19 }
  0x83   : > { %765 = vrot.lane.b32.xlu0 %v2145_v16, %s1815_s19 }
  0x85   : > { %v602_v17 = vpop.permute.xlu1 %601 }
  0x86   : > { %503 = vrot.lane.b32.xlu1 %v454_v57, %s1812_s6 }
  0x87   : > { %487 = vrot.lane.b32.xlu0 %v390_v58, %s1812_s6 }
  0x88   : > { %v586_v21 = vpop.permute.xlu0 %585 }
  0x8a   : > { %572 = vrot.lane.b32.xlu1 %v2126_v3, %s1811_s30 }
  0x8b   : > { %556 = vrot.lane.b32.xlu0 %v2129_v5, %s1811_s30 }
  0x8c   : > { %v675_v24 = vpop.permute.xlu0 %674  ;;  %v549_v9 = vpop.permute.xlu1 %548 }
  0x8e   : > { %609 = vrot.lane.b32.xlu1 %v2070_v37, %s1809_s26 }
  0x8f   : > { %593 = vrot.lane.b32.xlu0 %v2075_v42, %s1809_s26 }
  0x90   : > { %v565_v30 = vpop.permute.xlu1 %564 }
  0x91   : > { %v480_v31 = vpop.permute.xlu0 %479 }
  0x92   : > { %657 = vrot.lane.b32.xlu1 %v2142_v15, %s1813_s9  ;;  %v802_v43 = vsel %vm800_vm2, %v1903_v19, %v480_v31 }
  0x93   : > { %641 = vrot.lane.b32.xlu0 %v2145_v16, %s1813_s9  ;;  %v835_v56 = vsel %vm833_vm3, %v802_v43, %v549_v9  ;;  %v471_v43 = vshrl.u32 %v2164_v27, 16 }
  0x94   : > { %v691_v40 = vpop.permute.xlu1 %690  ;;  %v868_v60 = vsel %vm866_vm4, %v835_v56, %v586_v21 }
  0x95   : > { %v496_v41 = vpop.permute.xlu0 %495 }
  0x96   : > { %v818_v44 = vsel %vm800_vm2, %v1906_v20, %v496_v41  ;;  %698 = vrot.lane.b32.xlu1 %v2176_v32, %s1810_s29 }
  0x97   : > { %v851_v47 = vsel %vm833_vm3, %v818_v44, %v565_v30  ;;  %682 = vrot.lane.b32.xlu0 %v2181_v33, %s1810_s29 }
  0x98   : > { %v650_v57 = vpop.permute.xlu1 %649  ;;  %v884_v58 = vsel %vm866_vm4, %v851_v47, %v602_v17  ;;  %v407_v47 = vshrl.u32 %v2167_v29, 16 }
  0x99   : > { %v634_v19 = vpop.permute.xlu0 %633  ;;  %v917_v2 = vsel %vm899_vm5, %v884_v58, %v650_v57 }
  0x9a   : > { %735 = vrot.lane.b32.xlu1 %v2114_v59, %s1814_s16  ;;  %v901_v6 = vsel %vm899_vm5, %v868_v60, %v634_v19  ;;  %v950_v11 = vsel %vm932_vm6, %v917_v2, %v691_v40  ;;  %v409_v57 = vor.u32 %v407_v47, %v405_v55 }
  0x9b   : > { %719 = vrot.lane.b32.xlu0 %v2119_v63, %s1814_s16  ;;  %v934_v13 = vsel %vm932_vm6, %v901_v6, %v675_v24 }
  0x9c   : > { %v728_v7 = vpop.permute.xlu1 %727  ;;  %v2282_v55 = vsel %vm346_vm1, %v409_v57, %v1937_v39 }
  0x9d   : > { %v712_v10 = vpop.permute.xlu0 %711  ;;  %v983_v14 = vsel %vm965_vm7, %v950_v11, %v728_v7 }
  0x9e   : > { %783 = vrot.lane.b32.xlu1 %v2204_v62, %s1815_s19  ;;  %v967_v17 = vsel %vm965_vm7, %v934_v13, %v712_v10 }
  0x9f   : > { %767 = vrot.lane.b32.xlu0 %v2207_v1, %s1815_s19 }
  0xa0   : > { %v776_v21 = vpop.permute.xlu1 %775 }
  0xa1   : > { %v760_v9 = vpop.permute.xlu0 %759  ;;  %v1024_v31 = vsel %vm998_vm8, %v983_v14, %v776_v21 }
  0xa2   : > { %v1000_v30 = vsel %vm998_vm8, %v967_v17, %v760_v9  ;;  %505 = vrot.lane.b32.xlu1 %v2142_v15, %s1812_s6  ;;  %1271 = vmatmul.mubr.bf16.vlgmr.msra.gmra.mrb[0].mxu1 %v1024_v31 }
  0xa3   : > { %489 = vrot.lane.b32.xlu0 %v2145_v16, %s1812_s6  ;;  %1207 = vmatmul.mubr.bf16.vlgmr.msra.gmra.mrb[0].mxu0 %v1000_v30  ;;  %v2238_v16 = vrot.slane %v2164_v27, 1 }
  0xa4   : > { %v498_v24 = vpop.permute.xlu1 %497  ;;  %1643 = vmatprep.mubr.msk.bf16.mxu0 %vm800_vm2, %v2087_v46  ;;  %1651 = vmatprep.mubr.msk.bf16.mxu1 %vm800_vm2, %v2084_v45  ;;  %v528_v46 = vrot.slane %v2167_v29, 1  ;;  %v2242_v45 = vld [vmem:[%s1870_s23 + $0x80] sm:$0xff]  }
  0xa5   : > { %v482_v34 = vpop.permute.xlu0 %481  ;;  %v2252_v40 = vsel %vm514_vm0, %v542_v25, %v2238_v16  ;;  %v621_v44 = vshll.u32 %v2242_v45, 16  ;;  %v2268_v25 = vor.u32 %v471_v43, %v469_v50  ;;  %v820_v58 = vsel %vm800_vm2, %v1876_v4, %v498_v24 }
  0xa6   : > { %574 = vrot.lane.b32.xlu1 %v2176_v32, %s1811_s30  ;;  %v2259_v41 = vsel %vm514_vm0, %v526_v18, %v528_v46  ;;  %v804_v60 = vsel %vm800_vm2, %v1883_v8, %v482_v34  ;;  %v625_v47 = vshrl.u32 %v2242_v45, 16 }
  0xa7   : > { %558 = vrot.lane.b32.xlu0 %v2181_v33, %s1811_s30  ;;  %v623_v56 = vrot.slane %v621_v44, 1  ;;  %v2334_v44 = vsel %vm514_vm0, %v528_v46, %v530_v28 }
  0xa8   : > { %v567_v15 = vpop.permute.xlu1 %566 }
  0xa9   : > { %v551_v35 = vpop.permute.xlu0 %550  ;;  %v624_v50 = vsel %vm346_vm1, %v2268_v25, %v623_v56  ;;  %v853_v2 = vsel %vm833_vm3, %v820_v58, %v567_v15 }
  0xaa   : > { %611 = vrot.lane.b32.xlu1 %v2114_v59, %s1809_s26  ;;  %v837_v6 = vsel %vm833_vm3, %v804_v60, %v551_v35 }
  0xab   : > { %595 = vrot.lane.b32.xlu0 %v2119_v63, %s1809_s26 }
  0xac   : > { %v604_v23 = vpop.permute.xlu1 %603 }
  0xad   : > { %v588_v36 = vpop.permute.xlu0 %587  ;;  %v886_v11 = vsel %vm866_vm4, %v853_v2, %v604_v23 }
  0xae   : > { %659 = vrot.lane.b32.xlu1 %v2204_v62, %s1813_s9  ;;  %v870_v13 = vsel %vm866_vm4, %v837_v6, %v588_v36 }
  0xaf   : > { %643 = vrot.lane.b32.xlu0 %v2207_v1, %s1813_s9 }
  0xb0   : > { %v652_v48 = vpop.permute.xlu1 %651 }
  0xb1   : > { %v636_v51 = vpop.permute.xlu0 %635  ;;  %v919_v14 = vsel %vm899_vm5, %v886_v11, %v652_v48 }
  0xb2   : > { %700 = vrot.lane.b32.xlu1 %v2252_v40, %s1810_s29  ;;  %v903_v8 = vsel %vm899_vm5, %v870_v13, %v636_v51  ;;  %v1781_v51 = vld [vmem:[%s1870_s23 + $0x80] ss:$0 sps:$4 sm:$0x11]  }
  0xb3   : > { %684 = vrot.lane.b32.xlu0 %v2259_v41, %s1810_s29  ;;  %v475_v60 = vshll.u32 %v1781_v51, 16 }
  0xb4   : > { %v693_v18 = vpop.permute.xlu1 %692 }
  0xb5   : > { %v677_v19 = vpop.permute.xlu0 %676  ;;  %v952_v39 = vsel %vm932_vm6, %v919_v14, %v693_v18 }
  0xb6   : > { %737 = vrot.lane.b32.xlu1 %v2164_v27, %s1814_s16  ;;  %v936_v17 = vsel %vm932_vm6, %v903_v8, %v677_v19  ;;  %v627_v19 = vor.u32 %v625_v47, %v623_v56  ;;  %v477_v56 = vrot.slane %v475_v60, 1 }
  0xb7   : > { %721 = vrot.lane.b32.xlu0 %v2167_v29, %s1814_s16 }
  0xb8   : > { %v730_v7 = vpop.permute.xlu1 %729 }
  0xb9   : > { %v714_v10 = vpop.permute.xlu0 %713  ;;  %v985_v21 = vsel %vm965_vm7, %v952_v39, %v730_v7 }
  0xba   : > { %785 = vrot.lane.b32.xlu1 %v624_v50, %s1815_s19  ;;  %v969_v9 = vsel %vm965_vm7, %v936_v17, %v714_v10 }
  0xbb   : > { %769 = vrot.lane.b32.xlu0 %v2282_v55, %s1815_s19 }
  0xbc   : > { %v778_v30 = vpop.permute.xlu1 %777 }
  0xbd   : > { %v762_v31 = vpop.permute.xlu0 %761  ;;  %v1027_v34 = vsel %vm998_vm8, %v985_v21, %v778_v30  ;;  %v478_v21 = vsel %vm346_vm1, %v2268_v25, %v477_v56  ;;  %v1782_v30 = vld [vmem:[%s1870_s23 + $0x88] ss:$0 sps:$4 sm:$0x11]  }
  0xbe   : > { %v1003_v24 = vsel %vm998_vm8, %v969_v9, %v762_v31  ;;  %507 = vrot.lane.b32.xlu1 %v2204_v62, %s1812_s6  ;;  %1279 = vmatmul.mubr.bf16.gmra.mrb[4].mxu1 %v1027_v34  ;;  %v546_v9 = vrot.slane %v1781_v51, 1  ;;  %v2388_v51 = vld [vmem:[%s1870_s23 + $0x90] ss:$0 sps:$4 sm:$0x11]  }
  0xbf   : > { %491 = vrot.lane.b32.xlu0 %v2207_v1, %s1812_s6  ;;  %1215 = vmatmul.mubr.bf16.gmra.mrb[4].mxu0 %v1003_v24  ;;  %v2319_v1 = vld [vmem:[%s1870_s23 + $0x88] sm:$0xff]   ;;  %v755_v60 = vshll.u32 %v2388_v51, 16 }
  0xc0   : > { %v500_v15 = vpop.permute.xlu1 %499  ;;  %1644 = vmatprep.mubr.msk.bf16.mxu0 %vm800_vm2, %v2129_v5  ;;  %1652 = vmatprep.mubr.msk.bf16.mxu1 %vm800_vm2, %v2126_v3  ;;  %v2316_v5 = vrot.slane %v2242_v45, 1  ;;  %v747_v48 = vshll.u32 %v2319_v1, 16  ;;  %v547_v25 = vsel %vm514_vm0, %v2238_v16, %v546_v9 }
  0xc1   : > { %v484_v35 = vpop.permute.xlu0 %483  ;;  %v822_v28 = vsel %vm800_vm2, %v1910_v22, %v500_v15 }
  0xc2   : > { %576 = vrot.lane.b32.xlu1 %v2252_v40, %s1811_s30  ;;  %v2327_v43 = vsel %vm514_vm0, %v2238_v16, %v2316_v5  ;;  %v749_v58 = vrot.slane %v747_v48, 1  ;;  %v806_v46 = vsel %vm800_vm2, %v1892_v12, %v484_v35 }
  0xc3   : > { %560 = vrot.lane.b32.xlu0 %v2259_v41, %s1811_s30 }
  0xc4   : > { %v569_v62 = vpop.permute.xlu1 %568  ;;  %v750_v6 = vsel %vm346_vm1, %v627_v19, %v749_v58 }
  0xc5   : > { %v553_v23 = vpop.permute.xlu0 %552  ;;  %v855_v7 = vsel %vm833_vm3, %v822_v28, %v569_v62 }
  0xc6   : > { %613 = vrot.lane.b32.xlu1 %v2164_v27, %s1809_s26  ;;  %v839_v10 = vsel %vm833_vm3, %v806_v46, %v553_v23  ;;  %v629_v23 = vshll.u32 %v1782_v30, 16 }
  0xc7   : > { %597 = vrot.lane.b32.xlu0 %v2167_v29, %s1809_s26 }
  0xc8   : > { %v606_v3 = vpop.permute.xlu1 %605 }
  0xc9   : > { %v590_v36 = vpop.permute.xlu0 %589  ;;  %v888_v14 = vsel %vm866_vm4, %v855_v7, %v606_v3 }
  0xca   : > { %661 = vrot.lane.b32.xlu1 %v624_v50, %s1813_s9  ;;  %v872_v8 = vsel %vm866_vm4, %v839_v10, %v590_v36 }
  0xcb   : > { %645 = vrot.lane.b32.xlu0 %v2282_v55, %s1813_s9 }
  0xcc   : > { %v654_v57 = vpop.permute.xlu1 %653 }
  0xcd   : > { %v638_v18 = vpop.permute.xlu0 %637  ;;  %v921_v39 = vsel %vm899_vm5, %v888_v14, %v654_v57 }
  0xce   : > { %702 = vrot.lane.b32.xlu1 %v2327_v43, %s1810_s29  ;;  %v905_v22 = vsel %vm899_vm5, %v872_v8, %v638_v18 }
  0xcf   : > { %686 = vrot.lane.b32.xlu0 %v2334_v44, %s1810_s29 }
  0xd0   : > { %v695_v50 = vpop.permute.xlu1 %694 }
  0xd1   : > { %v679_v2 = vpop.permute.xlu0 %678  ;;  %v954_v12 = vsel %vm932_vm6, %v921_v39, %v695_v50 }
  0xd2   : > { %739 = vrot.lane.b32.xlu1 %v2242_v45, %s1814_s16  ;;  %v938_v17 = vsel %vm932_vm6, %v905_v22, %v679_v2  ;;  %v757_v2 = vrot.slane %v755_v60, 1 }
  0xd3   : > { %723 = vrot.lane.b32.xlu0 %v1906_v20, %s1814_s16 }
  0xd4   : > { %v732_v11 = vpop.permute.xlu1 %731 }
  0xd5   : > { %v716_v13 = vpop.permute.xlu0 %715  ;;  %v987_v31 = vsel %vm965_vm7, %v954_v12, %v732_v11 }
  0xd6   : > { %787 = vrot.lane.b32.xlu1 %v750_v6, %s1815_s19  ;;  %v971_v24 = vsel %vm965_vm7, %v938_v17, %v716_v13 }
  0xd7   : > { %771 = vrot.lane.b32.xlu0 %v1963_v54, %s1815_s19 }
  0xd8   : > { %v780_v34 = vpop.permute.xlu1 %779 }
  0xd9   : > { %v764_v15 = vpop.permute.xlu0 %763  ;;  %v1030_v62 = vsel %vm998_vm8, %v987_v31, %v780_v34 }
  0xda   : > { %v1006_v35 = vsel %vm998_vm8, %v971_v24, %v764_v15  ;;  %509 = vrot.lane.b32.xlu1 %v478_v21, %s1812_s6  ;;  %1287 = vmatmul.mubr.bf16.gmra.mrb[8].mxu1 %v1030_v62 }
  0xdb   : > { %493 = vrot.lane.b32.xlu0 %v2282_v55, %s1812_s6  ;;  %1223 = vmatmul.mubr.bf16.gmra.mrb[8].mxu0 %v1006_v35  ;;  %v631_v55 = vrot.slane %v629_v23, 1 }
  0xdc   : > { %v502_v3 = vpop.permute.xlu1 %501  ;;  %1645 = vmatprep.mubr.msk.bf16.mxu0 %vm800_vm2, %v2181_v33  ;;  %1653 = vmatprep.mubr.msk.bf16.mxu1 %vm800_vm2, %v2176_v32  ;;  %v672_v33 = vrot.slane %v1782_v30, 1 }
  0xdd   : > { %v486_v36 = vpop.permute.xlu0 %485  ;;  %v632_v16 = vsel %vm346_vm1, %v627_v19, %v631_v55 }
  0xde   : > { %578 = vrot.lane.b32.xlu1 %v547_v25, %s1811_s30  ;;  %v673_v18 = vsel %vm514_vm0, %v2316_v5, %v672_v33  ;;  %v808_v6 = vsel %vm800_vm2, %v1957_v52, %v486_v36 }
  0xdf   : > { %562 = vrot.lane.b32.xlu0 %v2334_v44, %s1811_s30 }
  0xe0   : > { %v571_v47 = vpop.permute.xlu1 %570 }
  0xe1   : > { %v555_v48 = vpop.permute.xlu0 %554 }
  0xe2   : > { %615 = vrot.lane.b32.xlu1 %v2242_v45, %s1809_s26  ;;  %v751_v45 = vshrl.u32 %v2319_v1, 16 }
  0xe3   : > { %599 = vrot.lane.b32.xlu0 %v1906_v20, %s1809_s26 }
  0xe4   : > { %v608_v32 = vpop.permute.xlu1 %607  ;;  %v753_v19 = vor.u32 %v751_v45, %v749_v58  ;;  %v841_v58 = vsel %vm833_vm3, %v808_v6, %v555_v48 }
  0xe5   : > { %v592_v57 = vpop.permute.xlu0 %591 }
  0xe6   : > { %663 = vrot.lane.b32.xlu1 %v632_v16, %s1813_s9  ;;  %v758_v56 = vsel %vm346_vm1, %v753_v19, %v757_v2  ;;  %v874_v14 = vsel %vm866_vm4, %v841_v58, %v592_v57 }
  0xe7   : > { %647 = vrot.lane.b32.xlu0 %v1963_v54, %s1813_s9  ;;  %v824_v54 = vsel %vm800_vm2, %v1951_v49, %v502_v3 }
  0xe8   : > { %v656_v20 = vpop.permute.xlu1 %655  ;;  %v857_v7 = vsel %vm833_vm3, %v824_v54, %v571_v47 }
  0xe9   : > { %v640_v50 = vpop.permute.xlu0 %639  ;;  %v890_v13 = vsel %vm866_vm4, %v857_v7, %v608_v32 }
  0xea   : > { %704 = vrot.lane.b32.xlu1 %v673_v18, %s1810_s29  ;;  %v907_v8 = vsel %vm899_vm5, %v874_v14, %v640_v50 }
  0xeb   : > { %688 = vrot.lane.b32.xlu0 %v1935_v38, %s1810_s29 }
  0xec   : > { %v697_v28 = vpop.permute.xlu1 %696 }
  0xed   : > { %v681_v46 = vpop.permute.xlu0 %680 }
  0xee   : > { %741 = vrot.lane.b32.xlu1 %v2319_v1, %s1814_s16  ;;  %v940_v52 = vsel %vm932_vm6, %v907_v8, %v681_v46  ;;  %v796_v8 = vrot.slane %v2319_v1, 1 }
  0xef   : > { %725 = vrot.lane.b32.xlu0 %v1876_v4, %s1814_s16  ;;  %v923_v4 = vsel %vm899_vm5, %v890_v13, %v656_v20 }
  0xf0   : > { %v734_v10 = vpop.permute.xlu1 %733  ;;  %v956_v49 = vsel %vm932_vm6, %v923_v4, %v697_v28  ;;  %v797_v1 = vsel %vm514_vm0, %v2316_v5, %v796_v8 }
  0xf1   : > { %v718_v11 = vpop.permute.xlu0 %717  ;;  %v989_v39 = vsel %vm965_vm7, %v956_v49, %v734_v10 }
  0xf2   : > { %789 = vrot.lane.b32.xlu1 %v758_v56, %s1815_s19  ;;  %v973_v22 = vsel %vm965_vm7, %v940_v52, %v718_v11 }
  0xf3   : > { %773 = vrot.lane.b32.xlu0 %v1980_v61, %s1815_s19 }
  0xf4   : > { %v782_v12 = vpop.permute.xlu1 %781 }
  0xf5   : > { %v766_v17 = vpop.permute.xlu0 %765  ;;  %v1033_v9 = vsel %vm998_vm8, %v989_v39, %v782_v12 }
  0xf6   : > { %v1009_v21 = vsel %vm998_vm8, %v973_v22, %v766_v17  ;;  %1295 = vmatmul.mubr.bf16.gmra.mrb[12].mxu1 %v1033_v9 }
  0xf7   : > { %1231 = vmatmul.mubr.bf16.gmra.mrb[12].mxu0 %v1009_v21  ;;  %1654 = vmatprep.mubr.msk.bf16.mxu1 %vm800_vm2, %v2252_v40 }
  0xf8   : > { %1646 = vmatprep.mubr.msk.bf16.mxu0 %vm800_vm2, %v2259_v41  ;;  %v504_v61 = vpop.permute.xlu1 %503 }
  0xf9   : > { %v488_v30 = vpop.permute.xlu0 %487  ;;  %v826_v3 = vsel %vm800_vm2, %v2036_v0, %v504_v61 }
  0xfa   : > { %v810_v36 = vsel %vm800_vm2, %v2039_v26, %v488_v30 }
  0xfc   : > { %v573_v31 = vpop.permute.xlu1 %572 }
  0xfd   : > { %v557_v24 = vpop.permute.xlu0 %556  ;;  %v859_v41 = vsel %vm833_vm3, %v826_v3, %v573_v31 }
  0xfe   : > { %v843_v40 = vsel %vm833_vm3, %v810_v36, %v557_v24 }
 0x100   : > { %v610_v34 = vpop.permute.xlu1 %609 }
 0x101   : > { %v594_v15 = vpop.permute.xlu0 %593  ;;  %v892_v48 = vsel %vm866_vm4, %v859_v41, %v610_v34 }
 0x102   : > { %v876_v16 = vsel %vm866_vm4, %v843_v40, %v594_v15 }
 0x104   : > { %v658_v35 = vpop.permute.xlu1 %657 }
 0x105   : > { %v642_v62 = vpop.permute.xlu0 %641  ;;  %v925_v33 = vsel %vm899_vm5, %v892_v48, %v658_v35  ;;  %v798_v48 = vrot.slane %v2388_v51, 1 }
 0x106   : > { %v909_v32 = vsel %vm899_vm5, %v876_v16, %v642_v62 }
 0x107   : > { %v799_v51 = vsel %vm514_vm0, %v796_v8, %v798_v48 }
 0x108   : > { %v699_v25 = vpop.permute.xlu1 %698 }
 0x109   : > { %v683_v23 = vpop.permute.xlu0 %682  ;;  %v958_v57 = vsel %vm932_vm6, %v925_v33, %v699_v25 }
 0x10a   : > { %v942_v0 = vsel %vm932_vm6, %v909_v32, %v683_v23 }
 0x10c   : > { %v736_v55 = vpop.permute.xlu1 %735 }
 0x10d   : > { %v720_v47 = vpop.permute.xlu0 %719  ;;  %v991_v26 = vsel %vm965_vm7, %v958_v57, %v736_v55 }
 0x10e   : > { %v975_v18 = vsel %vm965_vm7, %v942_v0, %v720_v47 }
 0x110   : > { %v784_v45 = vpop.permute.xlu1 %783 }
 0x111   : > { %v768_v60 = vpop.permute.xlu0 %767  ;;  %v1036_v50 = vsel %vm998_vm8, %v991_v26, %v784_v45 }
 0x112   : > { %v1012_v20 = vsel %vm998_vm8, %v975_v18, %v768_v60  ;;  %1303 = vmatmul.mubr.bf16.gmra.mrb[16].mxu1 %v1036_v50 }
 0x113   : > { %1239 = vmatmul.mubr.bf16.gmra.mrb[16].mxu0 %v1012_v20  ;;  %1655 = vmatprep.mubr.msk.bf16.mxu1 %vm800_vm2, %v2327_v43 }
 0x114   : > { %1647 = vmatprep.mubr.msk.bf16.mxu0 %vm800_vm2, %v2334_v44  ;;  %v506_v19 = vpop.permute.xlu1 %505 }
 0x115   : > { %v490_v2 = vpop.permute.xlu0 %489  ;;  %v828_v11 = vsel %vm800_vm2, %v2070_v37, %v506_v19 }
 0x116   : > { %v812_v13 = vsel %vm800_vm2, %v2075_v42, %v490_v2 }
 0x118   : > { %v575_v28 = vpop.permute.xlu1 %574 }
 0x119   : > { %v559_v46 = vpop.permute.xlu0 %558  ;;  %v861_v44 = vsel %vm833_vm3, %v828_v11, %v575_v28 }
 0x11a   : > { %v845_v43 = vsel %vm833_vm3, %v812_v13, %v559_v46 }
 0x11c   : > { %v612_v54 = vpop.permute.xlu1 %611 }
 0x11d   : > { %v596_v6 = vpop.permute.xlu0 %595  ;;  %v894_v49 = vsel %vm866_vm4, %v861_v44, %v612_v54 }
 0x11e   : > { %v878_v52 = vsel %vm866_vm4, %v845_v43, %v596_v6 }
 0x120   : > { %v660_v56 = vpop.permute.xlu1 %659 }
 0x121   : > { %v644_v7 = vpop.permute.xlu0 %643  ;;  %v927_v39 = vsel %vm899_vm5, %v894_v49, %v660_v56 }
 0x122   : > { %v911_v22 = vsel %vm899_vm5, %v878_v52, %v644_v7 }
 0x124   : > { %v701_v58 = vpop.permute.xlu1 %700 }
 0x125   : > { %v685_v10 = vpop.permute.xlu0 %684  ;;  %v960_v37 = vsel %vm932_vm6, %v927_v39, %v701_v58 }
 0x126   : > { %v944_v42 = vsel %vm932_vm6, %v911_v22, %v685_v10 }
 0x128   : > { %v738_v14 = vpop.permute.xlu1 %737 }
 0x129   : > { %v722_v4 = vpop.permute.xlu0 %721  ;;  %v993_v12 = vsel %vm965_vm7, %v960_v37, %v738_v14 }
 0x12a   : > { %v977_v17 = vsel %vm965_vm7, %v944_v42, %v722_v4 }
 0x12c   : > { %v786_v21 = vpop.permute.xlu1 %785 }
 0x12d   : > { %v770_v9 = vpop.permute.xlu0 %769  ;;  %v1039_v30 = vsel %vm998_vm8, %v993_v12, %v786_v21 }
 0x12e   : > { %v1015_v61 = vsel %vm998_vm8, %v977_v17, %v770_v9  ;;  %1311 = vmatmul.mubr.bf16.gmra.mrb[20].mxu1 %v1039_v30  ;;  %v2510_v17 = vld [vmem:[%s2559_s2] ss:$0 sm:$0xff] }
 0x12f   : > { %1247 = vmatmul.mubr.bf16.gmra.mrb[20].mxu0 %v1015_v61  ;;  %1656 = vmatprep.mubr.msk.bf16.mxu1 %vm800_vm2, %v797_v1 }
 0x130   : > { %1648 = vmatprep.mubr.msk.bf16.mxu0 %vm800_vm2, %v1935_v38  ;;  %v508_v31 = vpop.permute.xlu1 %507 }
 0x131   : > { %v492_v24 = vpop.permute.xlu0 %491  ;;  %v830_v36 = vsel %vm800_vm2, %v2114_v59, %v508_v31 }
 0x132   : > { %v814_v41 = vsel %vm800_vm2, %v2119_v63, %v492_v24 }
 0x134   : > { %v577_v34 = vpop.permute.xlu1 %576 }
 0x135   : > { %v561_v15 = vpop.permute.xlu0 %560  ;;  %v863_v38 = vsel %vm833_vm3, %v830_v36, %v577_v34 }
 0x136   : > { %v847_v40 = vsel %vm833_vm3, %v814_v41, %v561_v15 }
 0x138   : > { %v614_v35 = vpop.permute.xlu1 %613 }
 0x139   : > { %v598_v62 = vpop.permute.xlu0 %597  ;;  %v896_v16 = vsel %vm866_vm4, %v863_v38, %v614_v35 }
 0x13a   : > { %v880_v33 = vsel %vm866_vm4, %v847_v40, %v598_v62 }
 0x13c   : > { %v662_v25 = vpop.permute.xlu1 %661 }
 0x13d   : > { %v646_v23 = vpop.permute.xlu0 %645  ;;  %v929_v32 = vsel %vm899_vm5, %v896_v16, %v662_v25 }
 0x13e   : > { %v913_v57 = vsel %vm899_vm5, %v880_v33, %v646_v23 }
 0x140   : > { %v703_v5 = vpop.permute.xlu1 %702 }
 0x141   : > { %v687_v3 = vpop.permute.xlu0 %686  ;;  %v962_v59 = vsel %vm932_vm6, %v929_v32, %v703_v5 }
 0x142   : > { %v946_v63 = vsel %vm932_vm6, %v913_v57, %v687_v3 }
 0x144   : > { %v740_v55 = vpop.permute.xlu1 %739 }
 0x145   : > { %v724_v47 = vpop.permute.xlu0 %723  ;;  %v995_v0 = vsel %vm965_vm7, %v962_v59, %v740_v55 }
 0x146   : > { %v979_v26 = vsel %vm965_vm7, %v946_v63, %v724_v47 }
 0x148   : > { %v788_v18 = vpop.permute.xlu1 %787 }
 0x149   : > { %v772_v45 = vpop.permute.xlu0 %771  ;;  %v1042_v20 = vsel %vm998_vm8, %v995_v0, %v788_v18 }
 0x14a   : > { %v1018_v60 = vsel %vm998_vm8, %v979_v26, %v772_v45  ;;  %1319 = vmatmul.mubr.bf16.gmra.mrb[24].mxu1 %v1042_v20 }
 0x14b   : > { %1255 = vmatmul.mubr.bf16.gmra.mrb[24].mxu0 %v1018_v60  ;;  %1657 = vmatprep.mubr.msk.bf16.mxu1 %vm800_vm2, %v799_v51 }
 0x14c   : > { %1649 = vmatprep.mubr.msk.bf16.mxu0 %vm800_vm2, %v1960_v53  ;;  %v510_v50 = vpop.permute.xlu1 %509 }
 0x14d   : > { %v494_v19 = vpop.permute.xlu0 %493  ;;  %v832_v10 = vsel %vm800_vm2, %v2164_v27, %v510_v50 }
 0x14e   : > { %v816_v11 = vsel %vm800_vm2, %v2167_v29, %v494_v19 }
 0x150   : > { %v579_v2 = vpop.permute.xlu1 %578 }
 0x151   : > { %v563_v28 = vpop.permute.xlu0 %562  ;;  %v865_v53 = vsel %vm833_vm3, %v832_v10, %v579_v2 }
 0x152   : > { %v849_v13 = vsel %vm833_vm3, %v816_v11, %v563_v28 }
 0x154   : > { %v616_v46 = vpop.permute.xlu1 %615 }
 0x155   : > { %v600_v54 = vpop.permute.xlu0 %599  ;;  %v898_v14 = vsel %vm866_vm4, %v865_v53, %v616_v46 }
 0x156   : > { %v882_v4 = vsel %vm866_vm4, %v849_v13, %v600_v54 }
 0x158   : > { %v664_v6 = vpop.permute.xlu1 %663 }
 0x159   : > { %v648_v56 = vpop.permute.xlu0 %647  ;;  %v931_v8 = vsel %vm899_vm5, %v898_v14, %v664_v6 }
 0x15a   : > { %v915_v49 = vsel %vm899_vm5, %v882_v4, %v648_v56 }
 0x15c   : > { %v705_v7 = vpop.permute.xlu1 %704 }
 0x15d   : > { %v689_v58 = vpop.permute.xlu0 %688  ;;  %v964_v52 = vsel %vm932_vm6, %v931_v8, %v705_v7 }
 0x15e   : > { %v948_v27 = vsel %vm932_vm6, %v915_v49, %v689_v58 }
 0x160   : > { %v742_v44 = vpop.permute.xlu1 %741 }
 0x161   : > { %v726_v43 = vpop.permute.xlu0 %725  ;;  %v997_v29 = vsel %vm965_vm7, %v964_v52, %v742_v44 }
 0x162   : > { %v981_v39 = vsel %vm965_vm7, %v948_v27, %v726_v43 }
 0x164   : > { %v790_v22 = vpop.permute.xlu1 %789 }
 0x165   : > { %v774_v37 = vpop.permute.xlu0 %773  ;;  %v1045_v12 = vsel %vm998_vm8, %v997_v29, %v790_v22 }
 0x166   : > { %v1021_v42 = vsel %vm998_vm8, %v981_v39, %v774_v37  ;;  %1327 = vmatmul.mubr.bf16.gmra.mrb[28].mxu1 %v1045_v12 }
 0x167   : > { %1263 = vmatmul.mubr.bf16.gmra.mrb[28].mxu0 %v1021_v42 }
 0x175   : > { %v1272_v9 = vpop.f32.mrb[0].mxu1 }
 0x176   : > { %v1208_v21 = vpop.f32.mrb[0].mxu0  ;;  %v1273_v61 = vadd.f32 %v2510_v17, %v1272_v9  ;;  %v1274_v31 = vpop.f32.mrb[1].mxu1 }
 0x177   : > { %v1209_v1 = vadd.f32 %v2510_v17, %v1208_v21  ;;  %v1210_v30 = vpop.f32.mrb[1].mxu0  ;;  %v1275_v34 = vpop.f32.mrb[2].mxu1 }
 0x178   : > { %v1211_v24 = vpop.f32.mrb[2].mxu0  ;;  %vm1351_vm10 = vcmp.gt.f32.partialorder %v1273_v61, 0.0  ;;  %v1383_v35 = vmul.f32 0.1, %v1273_v61  ;;  %v1276_v25 = vadd.f32 %v2510_v17, %v1275_v34  ;;  %v1277_v5 = vpop.f32.mrb[3].mxu1 }
 0x179   : > { %vm1335_vm9 = vcmp.gt.f32.partialorder %v1209_v1, 0.0  ;;  %v1367_v15 = vmul.f32 0.1, %v1209_v1  ;;  %v1212_v62 = vadd.f32 %v2510_v17, %v1211_v24  ;;  %v1213_v23 = vpop.f32.mrb[3].mxu0 }
 0x17a   : > { %v1415_v36 = vsel %vm1351_vm10, %v1273_v61, %v1383_v35  ;;  %vm1352_vm12 = vcmp.gt.f32.partialorder %v1276_v25, 0.0  ;;  %v1384_v38 = vmul.f32 0.1, %v1276_v25 }
 0x17b   : > { %v1399_v3 = vsel %vm1335_vm9, %v1209_v1, %v1367_v15  ;;  %vm1336_vm11 = vcmp.gt.f32.partialorder %v1212_v62, 0.0  ;;  %v1368_v41 = vmul.f32 0.1, %v1212_v62 }
 0x17c   : > { %v1714_v40 = vpack.i.bf16 %v1415_v36, %v1399_v3  ;;  %v1416_v47 = vsel %vm1352_vm12, %v1276_v25, %v1384_v38 }
 0x17d   : > { %v1400_v55 = vsel %vm1336_vm11, %v1212_v62, %v1368_v41 }
 0x17e   : > { %1715 = vxpose.xlu0.b32.start [1/16] (narrow) %v1714_v40, 8  ;;  %v1716_v48 = vpack.i.bf16 %v1416_v47, %v1400_v55 }
 0x182   : > { %1717 = vxpose.xlu0.b32.cont [2/16] (narrow) %v1716_v48, 8 }
 0x191   : > { %v1280_v33 = vpop.f32.mrb[4].mxu1 }
 0x192   : > { %v1216_v16 = vpop.f32.mrb[4].mxu0  ;;  %v1281_v57 = vadd.f32 %v2510_v17, %v1280_v33  ;;  %v1282_v63 = vpop.f32.mrb[5].mxu1 }
 0x193   : > { %v1217_v32 = vadd.f32 %v2510_v17, %v1216_v16  ;;  %v1218_v59 = vpop.f32.mrb[5].mxu0  ;;  %v1283_v26 = vpop.f32.mrb[6].mxu1 }
 0x194   : > { %v1219_v0 = vpop.f32.mrb[6].mxu0  ;;  %vm1353_vm14 = vcmp.gt.f32.partialorder %v1281_v57, 0.0  ;;  %v1385_v45 = vmul.f32 0.1, %v1281_v57  ;;  %v1284_v60 = vadd.f32 %v2510_v17, %v1283_v26  ;;  %v1285_v50 = vpop.f32.mrb[7].mxu1 }
 0x195   : > { %vm1337_vm13 = vcmp.gt.f32.partialorder %v1217_v32, 0.0  ;;  %v1369_v18 = vmul.f32 0.1, %v1217_v32  ;;  %v1220_v51 = vadd.f32 %v2510_v17, %v1219_v0  ;;  %v1221_v20 = vpop.f32.mrb[7].mxu0 }
 0x196   : > { %v1417_v2 = vsel %vm1353_vm14, %v1281_v57, %v1385_v45  ;;  %vm1354_vm0 = vcmp.gt.f32.partialorder %v1284_v60, 0.0  ;;  %v1386_v46 = vmul.f32 0.1, %v1284_v60 }
 0x197   : > { %v1401_v19 = vsel %vm1337_vm13, %v1217_v32, %v1369_v18  ;;  %vm1338_vm15 = vcmp.gt.f32.partialorder %v1220_v51, 0.0  ;;  %v1370_v28 = vmul.f32 0.1, %v1220_v51 }
 0x198   : > { %v1718_v54 = vpack.i.bf16 %v1417_v2, %v1401_v19  ;;  %v1418_v56 = vsel %vm1354_vm0, %v1284_v60, %v1386_v46 }
 0x199   : > { %v1402_v6 = vsel %vm1338_vm15, %v1220_v51, %v1370_v28 }
 0x19a   : > { %1719 = vxpose.xlu0.b32.cont [3/16] (narrow) %v1718_v54, 8  ;;  %v1720_v7 = vpack.i.bf16 %v1418_v56, %v1402_v6 }
 0x19e   : > { %1721 = vxpose.xlu0.b32.cont [4/16] (narrow) %v1720_v7, 8 }
 0x1ad   : > { %v1288_v10 = vpop.f32.mrb[8].mxu1 }
 0x1ae   : > { %v1224_v58 = vpop.f32.mrb[8].mxu0  ;;  %v1289_v53 = vadd.f32 %v2510_v17, %v1288_v10  ;;  %v1290_v44 = vpop.f32.mrb[9].mxu1 }
 0x1af   : > { %v1225_v11 = vadd.f32 %v2510_v17, %v1224_v58  ;;  %v1226_v13 = vpop.f32.mrb[9].mxu0  ;;  %v1291_v14 = vpop.f32.mrb[10].mxu1 }
 0x1b0   : > { %v1227_v43 = vpop.f32.mrb[10].mxu0  ;;  %vm1355_vm2 = vcmp.gt.f32.partialorder %v1289_v53, 0.0  ;;  %v1387_v8 = vmul.f32 0.1, %v1289_v53  ;;  %v1292_v52 = vadd.f32 %v2510_v17, %v1291_v14  ;;  %v1293_v29 = vpop.f32.mrb[11].mxu1 }
 0x1b1   : > { %vm1339_vm1 = vcmp.gt.f32.partialorder %v1225_v11, 0.0  ;;  %v1371_v4 = vmul.f32 0.1, %v1225_v11  ;;  %v1228_v49 = vadd.f32 %v2510_v17, %v1227_v43  ;;  %v1229_v27 = vpop.f32.mrb[11].mxu0 }
 0x1b2   : > { %v1419_v22 = vsel %vm1355_vm2, %v1289_v53, %v1387_v8  ;;  %vm1356_vm4 = vcmp.gt.f32.partialorder %v1292_v52, 0.0  ;;  %v1388_v42 = vmul.f32 0.1, %v1292_v52 }
 0x1b3   : > { %v1403_v39 = vsel %vm1339_vm1, %v1225_v11, %v1371_v4  ;;  %vm1340_vm3 = vcmp.gt.f32.partialorder %v1228_v49, 0.0  ;;  %v1372_v37 = vmul.f32 0.1, %v1228_v49 }
 0x1b4   : > { %v1722_v12 = vpack.i.bf16 %v1419_v22, %v1403_v39  ;;  %v1420_v9 = vsel %vm1356_vm4, %v1292_v52, %v1388_v42 }
 0x1b5   : > { %v1404_v21 = vsel %vm1340_vm3, %v1228_v49, %v1372_v37 }
 0x1b6   : > { %1723 = vxpose.xlu0.b32.cont [5/16] (narrow) %v1722_v12, 8  ;;  %v1724_v1 = vpack.i.bf16 %v1420_v9, %v1404_v21 }
 0x1ba   : > { %1725 = vxpose.xlu0.b32.cont [6/16] (narrow) %v1724_v1, 8 }
 0x1c9   : > { %v1296_v30 = vpop.f32.mrb[12].mxu1 }
 0x1ca   : > { %v1232_v61 = vpop.f32.mrb[12].mxu0  ;;  %v1297_v24 = vadd.f32 %v2510_v17, %v1296_v30  ;;  %v1298_v15 = vpop.f32.mrb[13].mxu1 }
 0x1cb   : > { %v1233_v31 = vadd.f32 %v2510_v17, %v1232_v61  ;;  %v1234_v34 = vpop.f32.mrb[13].mxu0  ;;  %v1299_v62 = vpop.f32.mrb[14].mxu1 }
 0x1cc   : > { %v1235_v35 = vpop.f32.mrb[14].mxu0  ;;  %vm1357_vm6 = vcmp.gt.f32.partialorder %v1297_v24, 0.0  ;;  %v1389_v23 = vmul.f32 0.1, %v1297_v24  ;;  %v1300_v3 = vadd.f32 %v2510_v17, %v1299_v62  ;;  %v1301_v41 = vpop.f32.mrb[15].mxu1 }
 0x1cd   : > { %vm1341_vm5 = vcmp.gt.f32.partialorder %v1233_v31, 0.0  ;;  %v1373_v25 = vmul.f32 0.1, %v1233_v31  ;;  %v1236_v5 = vadd.f32 %v2510_v17, %v1235_v35  ;;  %v1237_v36 = vpop.f32.mrb[15].mxu0 }
 0x1ce   : > { %v1421_v40 = vsel %vm1357_vm6, %v1297_v24, %v1389_v23  ;;  %vm1358_vm8 = vcmp.gt.f32.partialorder %v1300_v3, 0.0  ;;  %v1390_v47 = vmul.f32 0.1, %v1300_v3 }
 0x1cf   : > { %v1405_v38 = vsel %vm1341_vm5, %v1233_v31, %v1373_v25  ;;  %vm1342_vm7 = vcmp.gt.f32.partialorder %v1236_v5, 0.0  ;;  %v1374_v55 = vmul.f32 0.1, %v1236_v5 }
 0x1d0   : > { %v1726_v48 = vpack.i.bf16 %v1421_v40, %v1405_v38  ;;  %v1422_v33 = vsel %vm1358_vm8, %v1300_v3, %v1390_v47 }
 0x1d1   : > { %v1406_v16 = vsel %vm1342_vm7, %v1236_v5, %v1374_v55 }
 0x1d2   : > { %1727 = vxpose.xlu0.b32.cont [7/16] (narrow) %v1726_v48, 8  ;;  %v1728_v32 = vpack.i.bf16 %v1422_v33, %v1406_v16 }
 0x1d6   : > { %1729 = vxpose.xlu0.b32.cont [8/16] (narrow) %v1728_v32, 8 }
 0x1e5   : > { %v1304_v59 = vpop.f32.mrb[16].mxu1 }
 0x1e6   : > { %v1240_v57 = vpop.f32.mrb[16].mxu0  ;;  %v1305_v0 = vadd.f32 %v2510_v17, %v1304_v59  ;;  %v1306_v18 = vpop.f32.mrb[17].mxu1 }
 0x1e7   : > { %v1241_v63 = vadd.f32 %v2510_v17, %v1240_v57  ;;  %v1242_v26 = vpop.f32.mrb[17].mxu0  ;;  %v1307_v51 = vpop.f32.mrb[18].mxu1 }
 0x1e8   : > { %v1243_v45 = vpop.f32.mrb[18].mxu0  ;;  %vm1359_vm10 = vcmp.gt.f32.partialorder %v1305_v0, 0.0  ;;  %v1391_v20 = vmul.f32 0.1, %v1305_v0  ;;  %v1308_v19 = vadd.f32 %v2510_v17, %v1307_v51  ;;  %v1309_v28 = vpop.f32.mrb[19].mxu1 }
 0x1e9   : > { %vm1343_vm9 = vcmp.gt.f32.partialorder %v1241_v63, 0.0  ;;  %v1375_v60 = vmul.f32 0.1, %v1241_v63  ;;  %v1244_v50 = vadd.f32 %v2510_v17, %v1243_v45  ;;  %v1245_v2 = vpop.f32.mrb[19].mxu0 }
 0x1ea   : > { %v1423_v54 = vsel %vm1359_vm10, %v1305_v0, %v1391_v20  ;;  %vm1360_vm12 = vcmp.gt.f32.partialorder %v1308_v19, 0.0  ;;  %v1392_v56 = vmul.f32 0.1, %v1308_v19 }
 0x1eb   : > { %v1407_v46 = vsel %vm1343_vm9, %v1241_v63, %v1375_v60  ;;  %vm1344_vm11 = vcmp.gt.f32.partialorder %v1244_v50, 0.0  ;;  %v1376_v6 = vmul.f32 0.1, %v1244_v50 }
 0x1ec   : > { %v1730_v7 = vpack.i.bf16 %v1423_v54, %v1407_v46  ;;  %v1424_v10 = vsel %vm1360_vm12, %v1308_v19, %v1392_v56 }
 0x1ed   : > { %v1408_v58 = vsel %vm1344_vm11, %v1244_v50, %v1376_v6 }
 0x1ee   : > { %1731 = vxpose.xlu0.b32.cont [9/16] (narrow) %v1730_v7, 8  ;;  %v1732_v11 = vpack.i.bf16 %v1424_v10, %v1408_v58 }
 0x1f2   : > { %1733 = vxpose.xlu0.b32.cont [10/16] (narrow) %v1732_v11, 8 }
 0x201   : > { %v1312_v13 = vpop.f32.mrb[20].mxu1 }
 0x202   : > { %v1248_v53 = vpop.f32.mrb[20].mxu0  ;;  %v1313_v43 = vadd.f32 %v2510_v17, %v1312_v13  ;;  %v1314_v4 = vpop.f32.mrb[21].mxu1 }
 0x203   : > { %v1249_v44 = vadd.f32 %v2510_v17, %v1248_v53  ;;  %v1250_v14 = vpop.f32.mrb[21].mxu0  ;;  %v1315_v49 = vpop.f32.mrb[22].mxu1 }
 0x204   : > { %v1251_v8 = vpop.f32.mrb[22].mxu0  ;;  %vm1361_vm14 = vcmp.gt.f32.partialorder %v1313_v43, 0.0  ;;  %v1393_v27 = vmul.f32 0.1, %v1313_v43  ;;  %v1316_v39 = vadd.f32 %v2510_v17, %v1315_v49  ;;  %v1317_v37 = vpop.f32.mrb[23].mxu1 }
 0x205   : > { %vm1345_vm13 = vcmp.gt.f32.partialorder %v1249_v44, 0.0  ;;  %v1377_v52 = vmul.f32 0.1, %v1249_v44  ;;  %v1252_v29 = vadd.f32 %v2510_v17, %v1251_v8  ;;  %v1253_v22 = vpop.f32.mrb[23].mxu0 }
 0x206   : > { %v1425_v12 = vsel %vm1361_vm14, %v1313_v43, %v1393_v27  ;;  %vm1362_vm0 = vcmp.gt.f32.partialorder %v1316_v39, 0.0  ;;  %v1394_v9 = vmul.f32 0.1, %v1316_v39 }
 0x207   : > { %v1409_v42 = vsel %vm1345_vm13, %v1249_v44, %v1377_v52  ;;  %vm1346_vm15 = vcmp.gt.f32.partialorder %v1252_v29, 0.0  ;;  %v1378_v21 = vmul.f32 0.1, %v1252_v29 }
 0x208   : > { %v1734_v1 = vpack.i.bf16 %v1425_v12, %v1409_v42  ;;  %v1426_v30 = vsel %vm1362_vm0, %v1316_v39, %v1394_v9 }
 0x209   : > { %v1410_v61 = vsel %vm1346_vm15, %v1252_v29, %v1378_v21 }
 0x20a   : > { %1735 = vxpose.xlu0.b32.cont [11/16] (narrow) %v1734_v1, 8  ;;  %v1736_v31 = vpack.i.bf16 %v1426_v30, %v1410_v61 }
 0x20e   : > { %1737 = vxpose.xlu0.b32.cont [12/16] (narrow) %v1736_v31, 8 }
 0x21d   : > { %v1320_v34 = vpop.f32.mrb[24].mxu1 }
 0x21e   : > { %v1256_v24 = vpop.f32.mrb[24].mxu0  ;;  %v1321_v35 = vadd.f32 %v2510_v17, %v1320_v34  ;;  %v1322_v25 = vpop.f32.mrb[25].mxu1 }
 0x21f   : > { %v1257_v15 = vadd.f32 %v2510_v17, %v1256_v24  ;;  %v1258_v62 = vpop.f32.mrb[25].mxu0  ;;  %v1323_v5 = vpop.f32.mrb[26].mxu1 }
 0x220   : > { %v1259_v23 = vpop.f32.mrb[26].mxu0  ;;  %vm1363_vm2 = vcmp.gt.f32.partialorder %v1321_v35, 0.0  ;;  %v1395_v36 = vmul.f32 0.1, %v1321_v35  ;;  %v1324_v38 = vadd.f32 %v2510_v17, %v1323_v5  ;;  %v1325_v55 = vpop.f32.mrb[27].mxu1 }
 0x221   : > { %vm1347_vm1 = vcmp.gt.f32.partialorder %v1257_v15, 0.0  ;;  %v1379_v3 = vmul.f32 0.1, %v1257_v15  ;;  %v1260_v41 = vadd.f32 %v2510_v17, %v1259_v23  ;;  %v1261_v40 = vpop.f32.mrb[27].mxu0 }
 0x222   : > { %v1427_v48 = vsel %vm1363_vm2, %v1321_v35, %v1395_v36  ;;  %vm1364_vm4 = vcmp.gt.f32.partialorder %v1324_v38, 0.0  ;;  %v1396_v33 = vmul.f32 0.1, %v1324_v38 }
 0x223   : > { %v1411_v47 = vsel %vm1347_vm1, %v1257_v15, %v1379_v3  ;;  %vm1348_vm3 = vcmp.gt.f32.partialorder %v1260_v41, 0.0  ;;  %v1380_v16 = vmul.f32 0.1, %v1260_v41 }
 0x224   : > { %v1738_v32 = vpack.i.bf16 %v1427_v48, %v1411_v47  ;;  %v1428_v59 = vsel %vm1364_vm4, %v1324_v38, %v1396_v33 }
 0x225   : > { %v1412_v57 = vsel %vm1348_vm3, %v1260_v41, %v1380_v16 }
 0x226   : > { %1739 = vxpose.xlu0.b32.cont [13/16] (narrow) %v1738_v32, 8  ;;  %v1740_v63 = vpack.i.bf16 %v1428_v59, %v1412_v57 }
 0x22a   : > { %1741 = vxpose.xlu0.b32.cont [14/16] (narrow) %v1740_v63, 8 }
 0x239   : > { %v1328_v26 = vpop.f32.mrb[28].mxu1 }
 0x23a   : > { %v1264_v0 = vpop.f32.mrb[28].mxu0  ;;  %v1329_v45 = vadd.f32 %v2510_v17, %v1328_v26  ;;  %v1330_v60 = vpop.f32.mrb[29].mxu1 }
 0x23b   : > { %v1265_v18 = vadd.f32 %v2510_v17, %v1264_v0  ;;  %v1266_v51 = vpop.f32.mrb[29].mxu0  ;;  %v1331_v50 = vpop.f32.mrb[30].mxu1 }
 0x23c   : > { %v1267_v20 = vpop.f32.mrb[30].mxu0  ;;  %vm1365_vm6 = vcmp.gt.f32.partialorder %v1329_v45, 0.0  ;;  %v1397_v2 = vmul.f32 0.1, %v1329_v45  ;;  %v1332_v46 = vadd.f32 %v2510_v17, %v1331_v50  ;;  %v1333_v6 = vpop.f32.mrb[31].mxu1 }
 0x23d   : > { %vm1349_vm5 = vcmp.gt.f32.partialorder %v1265_v18, 0.0  ;;  %v1381_v19 = vmul.f32 0.1, %v1265_v18  ;;  %v1268_v28 = vadd.f32 %v2510_v17, %v1267_v20  ;;  %v1269_v54 = vpop.f32.mrb[31].mxu0 }
 0x23e   : > { %v1429_v7 = vsel %vm1365_vm6, %v1329_v45, %v1397_v2  ;;  %vm1366_vm8 = vcmp.gt.f32.partialorder %v1332_v46, 0.0  ;;  %v1398_v10 = vmul.f32 0.1, %v1332_v46 }
 0x23f   : > { %v1413_v56 = vsel %vm1349_vm5, %v1265_v18, %v1381_v19  ;;  %vm1350_vm7 = vcmp.gt.f32.partialorder %v1268_v28, 0.0  ;;  %v1382_v58 = vmul.f32 0.1, %v1268_v28 }
 0x240   : > { %v1742_v11 = vpack.i.bf16 %v1429_v7, %v1413_v56  ;;  %v1430_v13 = vsel %vm1366_vm8, %v1332_v46, %v1398_v10 }
 0x241   : > { %v1414_v53 = vsel %vm1350_vm7, %v1268_v28, %v1382_v58 }
 0x242   : > { %1743 = vxpose.xlu0.b32.cont [15/16] (narrow) %v1742_v11, 8  ;;  %v1744_v44 = vpack.i.bf16 %v1430_v13, %v1414_v53 }
 0x246   : > { %1745 = vxpose.xlu0.b32.end [16/16] (narrow) %v1744_v44, 8 }
 0x28a   : > { %v1746_v43 = vpop.trf.xlu0 }
 0x28b   : > { %v1750_v14 = vunpack.i.h.bf16 %v1746_v43  ;;  %v1747_v4 = vunpack.i.l.bf16 %v1746_v43 }
 0x28d   : > { %v1662_v17 = vpack.c.bf16 %v1750_v14, %v1747_v4 }
 0x28f   : > { %1503 = vst [vmem:[%s217_s27] sm:$0xff] %v1662_v17 }
 0x290 PF: > { %s13_s14 = sadd.s32 1, %s1806_s14   ;;  %s2561_s12 = smov %s1802_s13 }
 0x291   : > { %p10_p5 = scmp.ge.s32.totalorder %s13_s14, 4   ;;  %s2562_s13 = smov %s2564_s15 }
 0x293   :  { %12 = sbr.rel (!%p10_p5) target bundleno = 2 (0x2), region = 62 }

</bundles_post_ra>
